<compile_context>
chip_gen: v5e
topology: v5e:2x2
jax: 0.10.0
libtpu: 0.0.40
codegen_flags: <defaults>
</compile_context>

<pallas_src>
import jax
import jax.numpy as jnp
from jax.experimental import pallas as pl
from jax.experimental.pallas import tpu as pltpu

INPUT_SIZE = 28
HIDDEN = 64
NUM_CLASSES = 10
HP = 128                    # lane-aligned hidden/state width (one vreg lane span)
GP = 4 * HIDDEN             # packed gate width: [i|f] in block 0, [o|g] in block 1
MATMUL_DTYPE = jnp.float32  # set jnp.bfloat16 on v6e/v7x (f32 accumulation kept)

# PyTorch gate-row order is (i, f, g, o); packed column order is (i, f, o, g).
_GATE_ORDER = (0, 1, 3, 2)


def lstm_kernel(x_ref, w_ih_ref, w_hh_ref, b_ref, w_out_ref, b_out_ref,
                out_ref, gates_ref):
    """Single-invocation LSTM forward + linear head.

    x_ref:     (T*B, INPUT_SIZE)   time-major rows (row = t*B + b)
    w_ih_ref:  (INPUT_SIZE, GP)    packed gate columns [i|f|o|g], 64 each
    w_hh_ref:  (HP, GP)            rows >= HIDDEN are exactly zero
    b_ref:     (1, GP)             b_ih + b_hh, packed like w_ih
    w_out_ref: (HP, HP)            [:HIDDEN, :NUM_CLASSES] = W_out.T, rest zero
    b_out_ref: (1, HP)             [:NUM_CLASSES] = b_out
    out_ref:   (B, HP)             lane-dense padded logits
    gates_ref: (T*B, GP) f32 VMEM scratch for the hoisted input projection
    """
    B = out_ref.shape[0]
    T = x_ref.shape[0] // B

    # Hoisted input projection for all T steps, materialized to VMEM scratch
    # (not carried as a 16-vreg SSA value across the unrolled recurrence).
    gates_ref[...] = jnp.dot(x_ref[...], w_ih_ref[...],
                             preferred_element_type=jnp.float32) + b_ref[...]

    h = jnp.zeros((B, HP), jnp.float32)
    c = jnp.zeros((B, HP), jnp.float32)

    # Statically unrolled recurrence (T is a small compile-time constant).
    # Per step: 2 vregs reloaded from scratch + one (B,HP)x(HP,GP) MXU dot +
    # whole-vreg EUP calls + 2 XLU rolls.  (For large T: lax.fori_loop(unroll=4).)
    for t in range(T):
        g = gates_ref[pl.ds(t * B, B), :] + jnp.dot(
            h.astype(w_hh_ref.dtype), w_hh_ref[...],
            preferred_element_type=jnp.float32)
        blk0 = g[:, 0 * HP:1 * HP]                 # [  i   |  f   ]
        blk1 = g[:, 1 * HP:2 * HP]                 # [  o   |  g   ]
        sig0 = jax.nn.sigmoid(blk0)                # [ s(i) | s(f) ]
        sig1 = jax.nn.sigmoid(blk1)                # [ s(o) | s(g) ]
        tan1 = jnp.tanh(blk1)                      # [ t(o) | t(g) ]
        rs0 = pltpu.roll(sig0, HIDDEN, axis=1)     # [ s(f) | s(i) ]
        rt1 = pltpu.roll(tan1, HIDDEN, axis=1)     # [ t(g) | t(o) ]
        # Lanes 0..63:  c' = s(f)*c + s(i)*tanh(g);   h = s(o)*tanh(c').
        # Lanes 64..127 carry bounded garbage that is annihilated by the zero
        # rows of w_hh / w_out, so it never reaches live lanes or the logits.
        c = rs0 * c + sig0 * rt1
        h = sig1 * jnp.tanh(c)

    # Linear head on the final hidden state, written as a lane-dense (B, 128) slab.
    out_ref[...] = jnp.dot(h.astype(w_out_ref.dtype), w_out_ref[...],
                           preferred_element_type=jnp.float32) + b_out_ref[...]


def _pack_gate_cols(w, dtype):
    """(4*HIDDEN, in_dim) PyTorch layout -> (in_dim, GP) packed [i|f|o|g]."""
    in_dim = w.shape[1]
    w4 = w.reshape(4, HIDDEN, in_dim)[jnp.array(_GATE_ORDER)]   # (4, H, in)
    w4 = jnp.transpose(w4, (2, 0, 1))                           # (in, 4, H)
    return w4.reshape(in_dim, GP).astype(dtype)


def _pack_gate_bias(b):
    b4 = b.reshape(4, HIDDEN)[jnp.array(_GATE_ORDER)]
    return b4.reshape(1, GP).astype(jnp.float32)


def rnn_forward(x, params):
    """x: (B, T, INPUT_SIZE) float32, batch_first like the PyTorch module."""
    B, T, D = x.shape
    assert D == INPUT_SIZE

    # Time-major flattened rows (row = t*B + b): per-step gate slices in the
    # kernel are contiguous, sublane-aligned blocks. x is tiny; prep is cheap.
    x_2d = jnp.transpose(x, (1, 0, 2)).reshape(T * B, D).astype(MATMUL_DTYPE)

    w_ih_p = _pack_gate_cols(params["w_ih"], MATMUL_DTYPE)                  # (D, GP)
    w_hh_p = jnp.pad(_pack_gate_cols(params["w_hh"], MATMUL_DTYPE),
                     ((0, HP - HIDDEN), (0, 0)))                            # (HP, GP)
    b_p = _pack_gate_bias(params["b_ih"] + params["b_hh"])                  # (1, GP)
    w_out_p = jnp.zeros((HP, HP), MATMUL_DTYPE).at[
        :HIDDEN, :NUM_CLASSES].set(params["w_out"].T.astype(MATMUL_DTYPE))  # (HP, HP)
    b_out_p = jnp.zeros((1, HP), jnp.float32).at[
        0, :NUM_CLASSES].set(params["b_out"])                               # (1, HP)

    out_padded = pl.pallas_call(
        lstm_kernel,
        out_shape=jax.ShapeDtypeStruct((B, HP), jnp.float32),
        in_specs=[pl.BlockSpec(memory_space=pltpu.MemorySpace.VMEM)
                  for _ in range(6)],
        out_specs=pl.BlockSpec(memory_space=pltpu.MemorySpace.VMEM),
        scratch_shapes=[pltpu.VMEM((T * B, GP), jnp.float32)],
    )(x_2d, w_ih_p, w_hh_p, b_p, w_out_p, b_out_p)

    return out_padded[:, :NUM_CLASSES]


def rnn_reference(x, params):
    """Pure-JAX reference matching torch.nn.LSTM + Linear semantics."""
    B, T, _ = x.shape
    b = params["b_ih"] + params["b_hh"]
    h = jnp.zeros((B, HIDDEN), jnp.float32)
    c = jnp.zeros((B, HIDDEN), jnp.float32)
    for t in range(T):
        gates = x[:, t, :] @ params["w_ih"].T + h @ params["w_hh"].T + b
        i_g = jax.nn.sigmoid(gates[:, 0 * HIDDEN:1 * HIDDEN])
        f_g = jax.nn.sigmoid(gates[:, 1 * HIDDEN:2 * HIDDEN])
        g_g = jnp.tanh(gates[:, 2 * HIDDEN:3 * HIDDEN])
        o_g = jax.nn.sigmoid(gates[:, 3 * HIDDEN:4 * HIDDEN])
        c = f_g * c + i_g * g_g
        h = o_g * jnp.tanh(c)
    return h @ params["w_out"].T + params["b_out"]


def init_params(key):
    """Deterministic init mirroring PyTorch default U(-1/sqrt(H), 1/sqrt(H))."""
    k = 1.0 / jnp.sqrt(jnp.float32(HIDDEN))
    keys = jax.random.split(key, 6)
    u = lambda kk, shape: jax.random.uniform(kk, shape, jnp.float32, -k, k)
    return {
        "w_ih": u(keys[0], (4 * HIDDEN, INPUT_SIZE)),
        "w_hh": u(keys[1], (4 * HIDDEN, HIDDEN)),
        "b_ih": u(keys[2], (4 * HIDDEN,)),
        "b_hh": u(keys[3], (4 * HIDDEN,)),
        "w_out": u(keys[4], (NUM_CLASSES, HIDDEN)),
        "b_out": u(keys[5], (NUM_CLASSES,)),
    }


if __name__ == "__main__":
    key = jax.random.PRNGKey(0)
    pkey, xkey = jax.random.split(key)
    params = init_params(pkey)

    B, T = 8, 8  # small shapes; INPUT_SIZE=28 fixed by the module
    x = jax.random.normal(xkey, (B, T, INPUT_SIZE), jnp.float32)

    out = rnn_forward(x, params)
    out = jax.block_until_ready(out)

    ref = rnn_reference(x, params)
    assert out.shape == (B, NUM_CLASSES)
    assert jnp.allclose(out, ref, rtol=1e-3, atol=1e-3), "mismatch vs reference"

    print("KERNEL_OK")
</pallas_src>

<mosaic_0001>
module attributes {stable_mosaic.version = 11 : i64} {
  func.func @lstm_kernel(%arg0: memref<64x28xf32, #tpu.memory_space<vmem>>, %arg1: memref<28x256xf32, #tpu.memory_space<vmem>>, %arg2: memref<128x256xf32, #tpu.memory_space<vmem>>, %arg3: memref<1x256xf32, #tpu.memory_space<vmem>>, %arg4: memref<128x128xf32, #tpu.memory_space<vmem>>, %arg5: memref<1x128xf32, #tpu.memory_space<vmem>>, %arg6: memref<8x128xf32, #tpu.memory_space<vmem>>, %arg7: memref<64x256xf32, #tpu.memory_space<vmem>>) attributes {dimension_semantics = [], scalar_prefetch = 0 : i64, scratch_operands = 1 : i64, tpu.core_type = #tpu.core_type<tc>} {
    %c0 = arith.constant 0 : index
    %c0_0 = arith.constant 0 : index
    %0 = vector.load %arg0[%c0, %c0_0] : memref<64x28xf32, #tpu.memory_space<vmem>>, vector<64x28xf32>
    %c0_1 = arith.constant 0 : index
    %c0_2 = arith.constant 0 : index
    %1 = vector.load %arg1[%c0_1, %c0_2] : memref<28x256xf32, #tpu.memory_space<vmem>>, vector<28x256xf32>
    %cst = arith.constant dense<0.000000e+00> : vector<64x256xf32>
    %2 = tpu.matmul %0, %1, %cst {dimension_numbers = #tpu.dot_dimension_numbers<[1], [0], [0], [1], [0, 0, 1, 1], [], []>} : vector<64x28xf32>, vector<28x256xf32>, vector<64x256xf32> -> vector<64x256xf32>
    %c0_3 = arith.constant 0 : index
    %c0_4 = arith.constant 0 : index
    %3 = vector.load %arg3[%c0_3, %c0_4] : memref<1x256xf32, #tpu.memory_space<vmem>>, vector<1x256xf32>
    %4 = vector.broadcast %3 : vector<1x256xf32> to vector<64x256xf32>
    %5 = arith.addf %2, %4 : vector<64x256xf32>
    %c0_5 = arith.constant 0 : index
    %c0_6 = arith.constant 0 : index
    %6 = vector.load %arg7[%c0_5, %c0_6] : memref<64x256xf32, #tpu.memory_space<vmem>>, vector<64x256xf32>
    tpu.vector_store %arg7[%c0_5, %c0_6], %5 {strides = array<i32>} : memref<64x256xf32, #tpu.memory_space<vmem>>, vector<64x256xf32>,
    %cst_7 = arith.constant 0.000000e+00 : f32
    %7 = vector.broadcast %cst_7 : f32 to vector<8x128xf32>
    %cst_8 = arith.constant 0.000000e+00 : f32
    %8 = vector.broadcast %cst_8 : f32 to vector<8x128xf32>
    %c0_9 = arith.constant 0 : index
    %c0_10 = arith.constant 0 : index
    %9 = vector.load %arg7[%c0_9, %c0_10] : memref<64x256xf32, #tpu.memory_space<vmem>>, vector<8x256xf32>
    %c0_11 = arith.constant 0 : index
    %c0_12 = arith.constant 0 : index
    %10 = vector.load %arg2[%c0_11, %c0_12] : memref<128x256xf32, #tpu.memory_space<vmem>>, vector<128x256xf32>
    %cst_13 = arith.constant dense<0.000000e+00> : vector<8x256xf32>
    %11 = tpu.matmul %7, %10, %cst_13 {dimension_numbers = #tpu.dot_dimension_numbers<[1], [0], [0], [1], [0, 0, 1, 1], [], []>} : vector<8x128xf32>, vector<128x256xf32>, vector<8x256xf32> -> vector<8x256xf32>
    %12 = arith.addf %9, %11 : vector<8x256xf32>
    %13 = vector.extract_strided_slice %12 {offsets = [0, 0], sizes = [8, 128], strides = [1, 1]} : vector<8x256xf32> to vector<8x128xf32>
    %14 = vector.extract_strided_slice %12 {offsets = [0, 128], sizes = [8, 128], strides = [1, 1]} : vector<8x256xf32> to vector<8x128xf32>
    %15 = arith.negf %13 : vector<8x128xf32>
    %16 = math.exp %15 : vector<8x128xf32>
    %cst_14 = arith.constant 1.000000e+00 : f32
    %17 = vector.broadcast %cst_14 : f32 to vector<8x128xf32>
    %18 = arith.addf %17, %16 : vector<8x128xf32>
    %19 = arith.divf %17, %18 : vector<8x128xf32>
    %20 = arith.negf %14 : vector<8x128xf32>
    %21 = math.exp %20 : vector<8x128xf32>
    %cst_15 = arith.constant 1.000000e+00 : f32
    %22 = vector.broadcast %cst_15 : f32 to vector<8x128xf32>
    %23 = arith.addf %22, %21 : vector<8x128xf32>
    %24 = arith.divf %22, %23 : vector<8x128xf32>
    %25 = math.tanh %14 : vector<8x128xf32>
    %c64_i32 = arith.constant 64 : i32
    %26 = tpu.dynamic_rotate %19 by %c64_i32 dim 1 : vector<8x128xf32>, i32 -> vector<8x128xf32>
    %c64_i32_16 = arith.constant 64 : i32
    %27 = tpu.dynamic_rotate %25 by %c64_i32_16 dim 1 : vector<8x128xf32>, i32 -> vector<8x128xf32>
    %28 = arith.mulf %26, %8 : vector<8x128xf32>
    %29 = arith.mulf %19, %27 : vector<8x128xf32>
    %30 = arith.addf %28, %29 : vector<8x128xf32>
    %31 = math.tanh %30 : vector<8x128xf32>
    %32 = arith.mulf %24, %31 : vector<8x128xf32>
    %c8 = arith.constant 8 : index
    %c0_17 = arith.constant 0 : index
    %33 = vector.load %arg7[%c8, %c0_17] : memref<64x256xf32, #tpu.memory_space<vmem>>, vector<8x256xf32>
    %c0_18 = arith.constant 0 : index
    %c0_19 = arith.constant 0 : index
    %34 = vector.load %arg2[%c0_18, %c0_19] : memref<128x256xf32, #tpu.memory_space<vmem>>, vector<128x256xf32>
    %cst_20 = arith.constant dense<0.000000e+00> : vector<8x256xf32>
    %35 = tpu.matmul %32, %34, %cst_20 {dimension_numbers = #tpu.dot_dimension_numbers<[1], [0], [0], [1], [0, 0, 1, 1], [], []>} : vector<8x128xf32>, vector<128x256xf32>, vector<8x256xf32> -> vector<8x256xf32>
    %36 = arith.addf %33, %35 : vector<8x256xf32>
    %37 = vector.extract_strided_slice %36 {offsets = [0, 0], sizes = [8, 128], strides = [1, 1]} : vector<8x256xf32> to vector<8x128xf32>
    %38 = vector.extract_strided_slice %36 {offsets = [0, 128], sizes = [8, 128], strides = [1, 1]} : vector<8x256xf32> to vector<8x128xf32>
    %39 = arith.negf %37 : vector<8x128xf32>
    %40 = math.exp %39 : vector<8x128xf32>
    %cst_21 = arith.constant 1.000000e+00 : f32
    %41 = vector.broadcast %cst_21 : f32 to vector<8x128xf32>
    %42 = arith.addf %41, %40 : vector<8x128xf32>
    %43 = arith.divf %41, %42 : vector<8x128xf32>
    %44 = arith.negf %38 : vector<8x128xf32>
    %45 = math.exp %44 : vector<8x128xf32>
    %cst_22 = arith.constant 1.000000e+00 : f32
    %46 = vector.broadcast %cst_22 : f32 to vector<8x128xf32>
    %47 = arith.addf %46, %45 : vector<8x128xf32>
    %48 = arith.divf %46, %47 : vector<8x128xf32>
    %49 = math.tanh %38 : vector<8x128xf32>
    %c64_i32_23 = arith.constant 64 : i32
    %50 = tpu.dynamic_rotate %43 by %c64_i32_23 dim 1 : vector<8x128xf32>, i32 -> vector<8x128xf32>
    %c64_i32_24 = arith.constant 64 : i32
    %51 = tpu.dynamic_rotate %49 by %c64_i32_24 dim 1 : vector<8x128xf32>, i32 -> vector<8x128xf32>
    %52 = arith.mulf %50, %30 : vector<8x128xf32>
    %53 = arith.mulf %43, %51 : vector<8x128xf32>
    %54 = arith.addf %52, %53 : vector<8x128xf32>
    %55 = math.tanh %54 : vector<8x128xf32>
    %56 = arith.mulf %48, %55 : vector<8x128xf32>
    %c16 = arith.constant 16 : index
    %c0_25 = arith.constant 0 : index
    %57 = vector.load %arg7[%c16, %c0_25] : memref<64x256xf32, #tpu.memory_space<vmem>>, vector<8x256xf32>
    %c0_26 = arith.constant 0 : index
    %c0_27 = arith.constant 0 : index
    %58 = vector.load %arg2[%c0_26, %c0_27] : memref<128x256xf32, #tpu.memory_space<vmem>>, vector<128x256xf32>
    %cst_28 = arith.constant dense<0.000000e+00> : vector<8x256xf32>
    %59 = tpu.matmul %56, %58, %cst_28 {dimension_numbers = #tpu.dot_dimension_numbers<[1], [0], [0], [1], [0, 0, 1, 1], [], []>} : vector<8x128xf32>, vector<128x256xf32>, vector<8x256xf32> -> vector<8x256xf32>
    %60 = arith.addf %57, %59 : vector<8x256xf32>
    %61 = vector.extract_strided_slice %60 {offsets = [0, 0], sizes = [8, 128], strides = [1, 1]} : vector<8x256xf32> to vector<8x128xf32>
    %62 = vector.extract_strided_slice %60 {offsets = [0, 128], sizes = [8, 128], strides = [1, 1]} : vector<8x256xf32> to vector<8x128xf32>
    %63 = arith.negf %61 : vector<8x128xf32>
    %64 = math.exp %63 : vector<8x128xf32>
    %cst_29 = arith.constant 1.000000e+00 : f32
    %65 = vector.broadcast %cst_29 : f32 to vector<8x128xf32>
    %66 = arith.addf %65, %64 : vector<8x128xf32>
    %67 = arith.divf %65, %66 : vector<8x128xf32>
    %68 = arith.negf %62 : vector<8x128xf32>
    %69 = math.exp %68 : vector<8x128xf32>
    %cst_30 = arith.constant 1.000000e+00 : f32
    %70 = vector.broadcast %cst_30 : f32 to vector<8x128xf32>
    %71 = arith.addf %70, %69 : vector<8x128xf32>
    %72 = arith.divf %70, %71 : vector<8x128xf32>
    %73 = math.tanh %62 : vector<8x128xf32>
    %c64_i32_31 = arith.constant 64 : i32
    %74 = tpu.dynamic_rotate %67 by %c64_i32_31 dim 1 : vector<8x128xf32>, i32 -> vector<8x128xf32>
    %c64_i32_32 = arith.constant 64 : i32
    %75 = tpu.dynamic_rotate %73 by %c64_i32_32 dim 1 : vector<8x128xf32>, i32 -> vector<8x128xf32>
    %76 = arith.mulf %74, %54 : vector<8x128xf32>
    %77 = arith.mulf %67, %75 : vector<8x128xf32>
    %78 = arith.addf %76, %77 : vector<8x128xf32>
    %79 = math.tanh %78 : vector<8x128xf32>
    %80 = arith.mulf %72, %79 : vector<8x128xf32>
    %c24 = arith.constant 24 : index
    %c0_33 = arith.constant 0 : index
    %81 = vector.load %arg7[%c24, %c0_33] : memref<64x256xf32, #tpu.memory_space<vmem>>, vector<8x256xf32>
    %c0_34 = arith.constant 0 : index
    %c0_35 = arith.constant 0 : index
    %82 = vector.load %arg2[%c0_34, %c0_35] : memref<128x256xf32, #tpu.memory_space<vmem>>, vector<128x256xf32>
    %cst_36 = arith.constant dense<0.000000e+00> : vector<8x256xf32>
    %83 = tpu.matmul %80, %82, %cst_36 {dimension_numbers = #tpu.dot_dimension_numbers<[1], [0], [0], [1], [0, 0, 1, 1], [], []>} : vector<8x128xf32>, vector<128x256xf32>, vector<8x256xf32> -> vector<8x256xf32>
    %84 = arith.addf %81, %83 : vector<8x256xf32>
    %85 = vector.extract_strided_slice %84 {offsets = [0, 0], sizes = [8, 128], strides = [1, 1]} : vector<8x256xf32> to vector<8x128xf32>
    %86 = vector.extract_strided_slice %84 {offsets = [0, 128], sizes = [8, 128], strides = [1, 1]} : vector<8x256xf32> to vector<8x128xf32>
    %87 = arith.negf %85 : vector<8x128xf32>
    %88 = math.exp %87 : vector<8x128xf32>
    %cst_37 = arith.constant 1.000000e+00 : f32
    %89 = vector.broadcast %cst_37 : f32 to vector<8x128xf32>
    %90 = arith.addf %89, %88 : vector<8x128xf32>
    %91 = arith.divf %89, %90 : vector<8x128xf32>
    %92 = arith.negf %86 : vector<8x128xf32>
    %93 = math.exp %92 : vector<8x128xf32>
    %cst_38 = arith.constant 1.000000e+00 : f32
    %94 = vector.broadcast %cst_38 : f32 to vector<8x128xf32>
    %95 = arith.addf %94, %93 : vector<8x128xf32>
    %96 = arith.divf %94, %95 : vector<8x128xf32>
    %97 = math.tanh %86 : vector<8x128xf32>
    %c64_i32_39 = arith.constant 64 : i32
    %98 = tpu.dynamic_rotate %91 by %c64_i32_39 dim 1 : vector<8x128xf32>, i32 -> vector<8x128xf32>
    %c64_i32_40 = arith.constant 64 : i32
    %99 = tpu.dynamic_rotate %97 by %c64_i32_40 dim 1 : vector<8x128xf32>, i32 -> vector<8x128xf32>
    %100 = arith.mulf %98, %78 : vector<8x128xf32>
    %101 = arith.mulf %91, %99 : vector<8x128xf32>
    %102 = arith.addf %100, %101 : vector<8x128xf32>
    %103 = math.tanh %102 : vector<8x128xf32>
    %104 = arith.mulf %96, %103 : vector<8x128xf32>
    %c32 = arith.constant 32 : index
    %c0_41 = arith.constant 0 : index
    %105 = vector.load %arg7[%c32, %c0_41] : memref<64x256xf32, #tpu.memory_space<vmem>>, vector<8x256xf32>
    %c0_42 = arith.constant 0 : index
    %c0_43 = arith.constant 0 : index
    %106 = vector.load %arg2[%c0_42, %c0_43] : memref<128x256xf32, #tpu.memory_space<vmem>>, vector<128x256xf32>
    %cst_44 = arith.constant dense<0.000000e+00> : vector<8x256xf32>
    %107 = tpu.matmul %104, %106, %cst_44 {dimension_numbers = #tpu.dot_dimension_numbers<[1], [0], [0], [1], [0, 0, 1, 1], [], []>} : vector<8x128xf32>, vector<128x256xf32>, vector<8x256xf32> -> vector<8x256xf32>
    %108 = arith.addf %105, %107 : vector<8x256xf32>
    %109 = vector.extract_strided_slice %108 {offsets = [0, 0], sizes = [8, 128], strides = [1, 1]} : vector<8x256xf32> to vector<8x128xf32>
    %110 = vector.extract_strided_slice %108 {offsets = [0, 128], sizes = [8, 128], strides = [1, 1]} : vector<8x256xf32> to vector<8x128xf32>
    %111 = arith.negf %109 : vector<8x128xf32>
    %112 = math.exp %111 : vector<8x128xf32>
    %cst_45 = arith.constant 1.000000e+00 : f32
    %113 = vector.broadcast %cst_45 : f32 to vector<8x128xf32>
    %114 = arith.addf %113, %112 : vector<8x128xf32>
    %115 = arith.divf %113, %114 : vector<8x128xf32>
    %116 = arith.negf %110 : vector<8x128xf32>
    %117 = math.exp %116 : vector<8x128xf32>
    %cst_46 = arith.constant 1.000000e+00 : f32
    %118 = vector.broadcast %cst_46 : f32 to vector<8x128xf32>
    %119 = arith.addf %118, %117 : vector<8x128xf32>
    %120 = arith.divf %118, %119 : vector<8x128xf32>
    %121 = math.tanh %110 : vector<8x128xf32>
    %c64_i32_47 = arith.constant 64 : i32
    %122 = tpu.dynamic_rotate %115 by %c64_i32_47 dim 1 : vector<8x128xf32>, i32 -> vector<8x128xf32>
    %c64_i32_48 = arith.constant 64 : i32
    %123 = tpu.dynamic_rotate %121 by %c64_i32_48 dim 1 : vector<8x128xf32>, i32 -> vector<8x128xf32>
    %124 = arith.mulf %122, %102 : vector<8x128xf32>
    %125 = arith.mulf %115, %123 : vector<8x128xf32>
    %126 = arith.addf %124, %125 : vector<8x128xf32>
    %127 = math.tanh %126 : vector<8x128xf32>
    %128 = arith.mulf %120, %127 : vector<8x128xf32>
    %c40 = arith.constant 40 : index
    %c0_49 = arith.constant 0 : index
    %129 = vector.load %arg7[%c40, %c0_49] : memref<64x256xf32, #tpu.memory_space<vmem>>, vector<8x256xf32>
    %c0_50 = arith.constant 0 : index
    %c0_51 = arith.constant 0 : index
    %130 = vector.load %arg2[%c0_50, %c0_51] : memref<128x256xf32, #tpu.memory_space<vmem>>, vector<128x256xf32>
    %cst_52 = arith.constant dense<0.000000e+00> : vector<8x256xf32>
    %131 = tpu.matmul %128, %130, %cst_52 {dimension_numbers = #tpu.dot_dimension_numbers<[1], [0], [0], [1], [0, 0, 1, 1], [], []>} : vector<8x128xf32>, vector<128x256xf32>, vector<8x256xf32> -> vector<8x256xf32>
    %132 = arith.addf %129, %131 : vector<8x256xf32>
    %133 = vector.extract_strided_slice %132 {offsets = [0, 0], sizes = [8, 128], strides = [1, 1]} : vector<8x256xf32> to vector<8x128xf32>
    %134 = vector.extract_strided_slice %132 {offsets = [0, 128], sizes = [8, 128], strides = [1, 1]} : vector<8x256xf32> to vector<8x128xf32>
    %135 = arith.negf %133 : vector<8x128xf32>
    %136 = math.exp %135 : vector<8x128xf32>
    %cst_53 = arith.constant 1.000000e+00 : f32
    %137 = vector.broadcast %cst_53 : f32 to vector<8x128xf32>
    %138 = arith.addf %137, %136 : vector<8x128xf32>
    %139 = arith.divf %137, %138 : vector<8x128xf32>
    %140 = arith.negf %134 : vector<8x128xf32>
    %141 = math.exp %140 : vector<8x128xf32>
    %cst_54 = arith.constant 1.000000e+00 : f32
    %142 = vector.broadcast %cst_54 : f32 to vector<8x128xf32>
    %143 = arith.addf %142, %141 : vector<8x128xf32>
    %144 = arith.divf %142, %143 : vector<8x128xf32>
    %145 = math.tanh %134 : vector<8x128xf32>
    %c64_i32_55 = arith.constant 64 : i32
    %146 = tpu.dynamic_rotate %139 by %c64_i32_55 dim 1 : vector<8x128xf32>, i32 -> vector<8x128xf32>
    %c64_i32_56 = arith.constant 64 : i32
    %147 = tpu.dynamic_rotate %145 by %c64_i32_56 dim 1 : vector<8x128xf32>, i32 -> vector<8x128xf32>
    %148 = arith.mulf %146, %126 : vector<8x128xf32>
    %149 = arith.mulf %139, %147 : vector<8x128xf32>
    %150 = arith.addf %148, %149 : vector<8x128xf32>
    %151 = math.tanh %150 : vector<8x128xf32>
    %152 = arith.mulf %144, %151 : vector<8x128xf32>
    %c48 = arith.constant 48 : index
    %c0_57 = arith.constant 0 : index
    %153 = vector.load %arg7[%c48, %c0_57] : memref<64x256xf32, #tpu.memory_space<vmem>>, vector<8x256xf32>
    %c0_58 = arith.constant 0 : index
    %c0_59 = arith.constant 0 : index
    %154 = vector.load %arg2[%c0_58, %c0_59] : memref<128x256xf32, #tpu.memory_space<vmem>>, vector<128x256xf32>
    %cst_60 = arith.constant dense<0.000000e+00> : vector<8x256xf32>
    %155 = tpu.matmul %152, %154, %cst_60 {dimension_numbers = #tpu.dot_dimension_numbers<[1], [0], [0], [1], [0, 0, 1, 1], [], []>} : vector<8x128xf32>, vector<128x256xf32>, vector<8x256xf32> -> vector<8x256xf32>
    %156 = arith.addf %153, %155 : vector<8x256xf32>
    %157 = vector.extract_strided_slice %156 {offsets = [0, 0], sizes = [8, 128], strides = [1, 1]} : vector<8x256xf32> to vector<8x128xf32>
    %158 = vector.extract_strided_slice %156 {offsets = [0, 128], sizes = [8, 128], strides = [1, 1]} : vector<8x256xf32> to vector<8x128xf32>
    %159 = arith.negf %157 : vector<8x128xf32>
    %160 = math.exp %159 : vector<8x128xf32>
    %cst_61 = arith.constant 1.000000e+00 : f32
    %161 = vector.broadcast %cst_61 : f32 to vector<8x128xf32>
    %162 = arith.addf %161, %160 : vector<8x128xf32>
    %163 = arith.divf %161, %162 : vector<8x128xf32>
    %164 = arith.negf %158 : vector<8x128xf32>
    %165 = math.exp %164 : vector<8x128xf32>
    %cst_62 = arith.constant 1.000000e+00 : f32
    %166 = vector.broadcast %cst_62 : f32 to vector<8x128xf32>
    %167 = arith.addf %166, %165 : vector<8x128xf32>
    %168 = arith.divf %166, %167 : vector<8x128xf32>
    %169 = math.tanh %158 : vector<8x128xf32>
    %c64_i32_63 = arith.constant 64 : i32
    %170 = tpu.dynamic_rotate %163 by %c64_i32_63 dim 1 : vector<8x128xf32>, i32 -> vector<8x128xf32>
    %c64_i32_64 = arith.constant 64 : i32
    %171 = tpu.dynamic_rotate %169 by %c64_i32_64 dim 1 : vector<8x128xf32>, i32 -> vector<8x128xf32>
    %172 = arith.mulf %170, %150 : vector<8x128xf32>
    %173 = arith.mulf %163, %171 : vector<8x128xf32>
    %174 = arith.addf %172, %173 : vector<8x128xf32>
    %175 = math.tanh %174 : vector<8x128xf32>
    %176 = arith.mulf %168, %175 : vector<8x128xf32>
    %c56 = arith.constant 56 : index
    %c0_65 = arith.constant 0 : index
    %177 = vector.load %arg7[%c56, %c0_65] : memref<64x256xf32, #tpu.memory_space<vmem>>, vector<8x256xf32>
    %c0_66 = arith.constant 0 : index
    %c0_67 = arith.constant 0 : index
    %178 = vector.load %arg2[%c0_66, %c0_67] : memref<128x256xf32, #tpu.memory_space<vmem>>, vector<128x256xf32>
    %cst_68 = arith.constant dense<0.000000e+00> : vector<8x256xf32>
    %179 = tpu.matmul %176, %178, %cst_68 {dimension_numbers = #tpu.dot_dimension_numbers<[1], [0], [0], [1], [0, 0, 1, 1], [], []>} : vector<8x128xf32>, vector<128x256xf32>, vector<8x256xf32> -> vector<8x256xf32>
    %180 = arith.addf %177, %179 : vector<8x256xf32>
    %181 = vector.extract_strided_slice %180 {offsets = [0, 0], sizes = [8, 128], strides = [1, 1]} : vector<8x256xf32> to vector<8x128xf32>
    %182 = vector.extract_strided_slice %180 {offsets = [0, 128], sizes = [8, 128], strides = [1, 1]} : vector<8x256xf32> to vector<8x128xf32>
    %183 = arith.negf %181 : vector<8x128xf32>
    %184 = math.exp %183 : vector<8x128xf32>
    %cst_69 = arith.constant 1.000000e+00 : f32
    %185 = vector.broadcast %cst_69 : f32 to vector<8x128xf32>
    %186 = arith.addf %185, %184 : vector<8x128xf32>
    %187 = arith.divf %185, %186 : vector<8x128xf32>
    %188 = arith.negf %182 : vector<8x128xf32>
    %189 = math.exp %188 : vector<8x128xf32>
    %cst_70 = arith.constant 1.000000e+00 : f32
    %190 = vector.broadcast %cst_70 : f32 to vector<8x128xf32>
    %191 = arith.addf %190, %189 : vector<8x128xf32>
    %192 = arith.divf %190, %191 : vector<8x128xf32>
    %193 = math.tanh %182 : vector<8x128xf32>
    %c64_i32_71 = arith.constant 64 : i32
    %194 = tpu.dynamic_rotate %187 by %c64_i32_71 dim 1 : vector<8x128xf32>, i32 -> vector<8x128xf32>
    %c64_i32_72 = arith.constant 64 : i32
    %195 = tpu.dynamic_rotate %193 by %c64_i32_72 dim 1 : vector<8x128xf32>, i32 -> vector<8x128xf32>
    %196 = arith.mulf %194, %174 : vector<8x128xf32>
    %197 = arith.mulf %187, %195 : vector<8x128xf32>
    %198 = arith.addf %196, %197 : vector<8x128xf32>
    %199 = math.tanh %198 : vector<8x128xf32>
    %200 = arith.mulf %192, %199 : vector<8x128xf32>
    %c0_73 = arith.constant 0 : index
    %c0_74 = arith.constant 0 : index
    %201 = vector.load %arg4[%c0_73, %c0_74] : memref<128x128xf32, #tpu.memory_space<vmem>>, vector<128x128xf32>
    %cst_75 = arith.constant dense<0.000000e+00> : vector<8x128xf32>
    %202 = tpu.matmul %200, %201, %cst_75 {dimension_numbers = #tpu.dot_dimension_numbers<[1], [0], [0], [1], [0, 0, 1, 1], [], []>} : vector<8x128xf32>, vector<128x128xf32>, vector<8x128xf32> -> vector<8x128xf32>
    %c0_76 = arith.constant 0 : index
    %c0_77 = arith.constant 0 : index
    %203 = vector.load %arg5[%c0_76, %c0_77] : memref<1x128xf32, #tpu.memory_space<vmem>>, vector<1x128xf32>
    %204 = vector.broadcast %203 : vector<1x128xf32> to vector<8x128xf32>
    %205 = arith.addf %202, %204 : vector<8x128xf32>
    %c0_78 = arith.constant 0 : index
    %c0_79 = arith.constant 0 : index
    %206 = vector.load %arg6[%c0_78, %c0_79] : memref<8x128xf32, #tpu.memory_space<vmem>>, vector<8x128xf32>
    tpu.vector_store %arg6[%c0_78, %c0_79], %205 {strides = array<i32>} : memref<8x128xf32, #tpu.memory_space<vmem>>, vector<8x128xf32>,
    return
  }
}

</mosaic_0001>

<bundles_post_ra>
// kernel: tpu_custom_call.1
= control target key start
LH: loop header
LB: loop body
LE: loop exit
PB: predicated region body
PF: predicated region fallthrough
CT: control target
= control target key end

     0   :  { %11 = vsyncpa [#allocation4], 0  ;;  %s1789_s0 = inlined_call_operand.vmem [shape: f32[64,28], index: 0, kind: input, shape index: {}]   ;;  %s1790_s1 = inlined_call_operand.vmem [shape: f32[28,256], index: 1, kind: input, shape index: {}]   ;;  %s1791_s2 = inlined_call_operand.hbm [shape: f32[128,256], index: 2, kind: input, shape index: {}]   ;;  %s1792_s3 = inlined_call_operand.vmem [shape: f32[1,256], index: 3, kind: input, shape index: {}]   ;;  %s1793_s4 = inlined_call_operand.hbm [shape: f32[128,128], index: 4, kind: input, shape index: {}]   ;;  %s1794_s5 = inlined_call_operand.vmem [shape: f32[1,128], index: 5, kind: input, shape index: {}]   ;;  %s1795_s6 = inlined_call_operand.hbm [shape: f32[8,128], index: 6, kind: output, shape index: {}]  }
   0x1   :  { %12 = vsyncpa [#allocation7], 0 }
   0x2   :  { %13 = vsyncpa [#allocation5], 0  ;;  %s22_s23 = sshll.u32 %s1791_s2, 4  ;;  %s1257_s24 = smov [#allocation3]   ;;  %s23_s23 = int_to_ptr.hbm [resolvable:$true] %s22_s23 }
   0x3   :  { %s24_s25 = sshll.u32 %s1257_s24, 4  ;;  %s37_s28 = sshll.u32 %s1793_s4, 4  ;;  %s25_s25 = int_to_ptr.vmem [resolvable:$true] %s24_s25  ;;  %s38_s28 = int_to_ptr.hbm [resolvable:$true] %s37_s28 }
   0x4   :  { %s1258_s29 = smov 256   ;;  %s1259_s30 = smov 16  }
   0x5   :  { %30 = dma.hbm_to_vmem [thread:$0]  %s23_s23, 4096, %s25_s25, [#allocation4], %s1258_s29, %s1258_s29, %s1259_s30  }
   0x6   :  { %s1260_s7 = smov [#allocation6]   ;;  %s1261_s9 = smov 128  }
   0x7   :  { %s39_s8 = sshll.u32 %s1260_s7, 4  ;;  %s1262_s10 = smov 8   ;;  %s40_s8 = int_to_ptr.vmem [resolvable:$true] %s39_s8 }
   0x8   :  { %45 = dma.hbm_to_vmem [thread:$0]  %s38_s28, 2048, %s40_s8, [#allocation7], %s1261_s9, %s1261_s9, %s1262_s10  }
   0x9   :  { %1251 = dma.done.wait [#allocation4], 4096  }
   0xa   :  { %1252 = vsyncadd [#allocation4], 4294963200 }
   0xb   :  { %1253 = dma.done.wait [#allocation7], 2048  }
   0xc   :  { %1254 = vsyncadd [#allocation7], 4294965248  ;;  %v1307_v0 = vld [vmem:[#allocation3 + $0xf0] sm:$0xff]  ;;  %v1309_v1 = vld [vmem:[#allocation3 + $0xe0] sm:$0xff]  ;;  %vm103_vm0 = vcmask 1043456   ;;  %vm78_vm1 = vcmask 228352  }
   0xd   :  { %242 = vmatpush.msra.mxu2 %v1307_v0  ;;  %v1312_v2 = vld [vmem:[#allocation3 + $0xd0] sm:$0xff]  ;;  %v1315_v3 = vld [vmem:[#allocation3 + $0xf8] sm:$0xff]  ;;  %v1317_v4 = vld [vmem:[#allocation3 + $0xe8] sm:$0xff]  ;;  %v1263_v42 = vmov 0.0   ;;  %s1265_s17 = smov [#allocation8]   ;;  %s1024_s21 = sshll.u32 %s1795_s6, 4  ;;  %s1025_s21 = int_to_ptr.hbm [resolvable:$true] %s1024_s21 }
   0xe   :  { %v1319_v5 = vld [vmem:[#allocation3 + $0xc0] sm:$0xff]  ;;  %262 = vmatpush.msra.mxu3 %v1315_v3  ;;  %v1323_v6 = vld [vmem:[#allocation3 + $0xd8] sm:$0xff]  ;;  %v1325_v7 = vld [vmem:[#allocation3 + $0xb0] sm:$0xff]  ;;  %s1022_s18 = sshll.u32 %s1265_s17, 4  ;;  %s1023_s18 = int_to_ptr.vmem [resolvable:$true] %s1022_s18 }
   0xf   :  { %243 = vmatpush.msra.mxu2 %v1309_v1  ;;  %v70_v8 = vld [vmem:[%s1790_s1 + $0x30] sm:$0xf]  ;;  %v1332_v9 = vld [vmem:[#allocation3 + $0xc8] sm:$0xff]  ;;  %v68_v10 = vld [vmem:[%s1790_s1 + $0x20] sm:$0xff] }
  0x10   :  { %263 = vmatpush.msra.mxu3 %v1317_v4  ;;  %1035 = vmatpush.msk.msra.mxu0 %vm103_vm0, %v70_v8  ;;  %v1338_v11 = vld [vmem:[#allocation3 + $0xa0] sm:$0xff]  ;;  %v66_v12 = vld [vmem:[%s1790_s1 + $0x10] sm:$0xff]  ;;  %v1346_v13 = vld [vmem:[#allocation3 + $0xb8] sm:$0xff] }
  0x11   :  { %244 = vmatpush.msra.mxu2 %v1312_v2  ;;  %1069 = vmatpush.msk.msra.mxu1 %vm103_vm0, %v70_v8  ;;  %v1348_v14 = vld [vmem:[#allocation3 + $0x90] sm:$0xff]  ;;  %v64_v15 = vld [vmem:[%s1790_s1] sm:$0xff]  ;;  %v1355_v16 = vld [vmem:[#allocation3 + $0xa8] sm:$0xff] }
  0x12   :  { %264 = vmatpush.msra.mxu3 %v1323_v6  ;;  %123 = vmatpush.msra.mxu0 %v68_v10  ;;  %v56_v17 = vld [vmem:[%s1789_s0] sm:$0xff]  ;;  %v1364_v19 = vld [vmem:[#allocation3 + $0x98] sm:$0xff]  ;;  %v1371_v21 = vld [vmem:[#allocation3 + $0x70] sm:$0xff] }
  0x13   :  { %245 = vmatpush.msra.mxu2 %v1319_v5  ;;  %1070 = vmatpush.msra.mxu1 %v68_v10  ;;  %v1360_v18 = vld [vmem:[#allocation3 + $0x80] sm:$0xff]  ;;  %v1369_v20 = vld [vmem:[%s1789_s0 + $0x38] sm:$0xff]  ;;  %v1379_v23 = vld [vmem:[#allocation3 + $0x88] sm:$0xff] }
  0x14   :  { %265 = vmatpush.msra.mxu3 %v1332_v9  ;;  %124 = vmatpush.msra.mxu0 %v66_v12  ;;  %v71_v22 = vld [vmem:[%s1790_s1 + $0x38] sm:$0xf]  ;;  %v1381_v24 = vld [vmem:[#allocation3 + $0x60] sm:$0xff]  ;;  %v69_v25 = vld [vmem:[%s1790_s1 + $0x28] sm:$0xff] }
  0x15   :  { %246 = vmatpush.msra.mxu2 %v1325_v7  ;;  %1071 = vmatpush.msra.mxu1 %v66_v12  ;;  %v1390_v26 = vld [vmem:[#allocation3 + $0x78] sm:$0xff]  ;;  %v1393_v27 = vld [vmem:[#allocation3 + $0x50] sm:$0xff]  ;;  %v1401_v29 = vld [vmem:[#allocation3 + $0x68] sm:$0xff] }
  0x16   :  { %266 = vmatpush.msra.mxu3 %v1346_v13  ;;  %125 = vmatpush.msra.mxu0 %v64_v15  ;;  %v67_v28 = vld [vmem:[%s1790_s1 + $0x18] sm:$0xff]  ;;  %v1403_v30 = vld [vmem:[#allocation3 + $0x40] sm:$0xff]  ;;  %v65_v31 = vld [vmem:[%s1790_s1 + $0x8] sm:$0xff] }
  0x17   :  { %247 = vmatpush.msra.mxu2 %v1338_v11  ;;  %1036 = vmatmul.msk.f32.vlgmr.msra.gmra.mxu0 %vm78_vm1, %v56_v17  ;;  %v1411_v32 = vld [vmem:[#allocation3 + $0x58] sm:$0xff]  ;;  %v1413_v33 = vld [vmem:[#allocation3 + $0x30] sm:$0xff]  ;;  %v1418_v34 = vld [vmem:[#allocation3 + $0x48] sm:$0xff] }
  0x18   :  { %267 = vmatpush.msra.mxu3 %v1355_v16  ;;  %1072 = vmatpush.msra.mxu1 %v64_v15  ;;  %v1420_v35 = vld [vmem:[#allocation3 + $0x20] sm:$0xff]  ;;  %v1425_v36 = vld [vmem:[#allocation3 + $0x38] sm:$0xff]  ;;  %v1428_v37 = vld [vmem:[#allocation3 + $0x10] sm:$0xff] }
  0x19   :  { %248 = vmatpush.msra.mxu2 %v1348_v14  ;;  %1043 = vmatmul.msk.f32.vlgmr.msra.gmra.mxu1 %vm78_vm1, %v1369_v20  ;;  %v1433_v38 = vld [vmem:[#allocation3 + $0x28] sm:$0xff]  ;;  %v1436_v39 = vld [vmem:[#allocation3] sm:$0xff]  ;;  %v1441_v40 = vld [vmem:[#allocation3 + $0x18] sm:$0xff] }
  0x1a   :  { %268 = vmatpush.msra.mxu3 %v1364_v19  ;;  %1044 = vmatpush.msk.msrb.mxu1 %vm103_vm0, %v71_v22  ;;  %v1447_v41 = vld [vmem:[#allocation3 + $0x8] sm:$0xff]  ;;  %v72_v43 = vld [vmem:[%s1792_s3] sm:$0x3]  ;;  %s1264_s3 = smov 64  }
  0x1b   :  { %249 = vmatpush.msra.mxu2 %v1360_v18  ;;  %426 = vmatpush.msrb.mxu0 %v1307_v0  ;;  %v1573_v44 = vperm.slane %v72_v43, 0  ;;  %v1578_v54 = vperm.slane %v72_v43, 1 }
  0x1c   :  { %269 = vmatpush.msra.mxu3 %v1379_v23  ;;  %164 = vmatpush.msrb.mxu1 %v69_v25 }
  0x1d   :  { %250 = vmatpush.msra.mxu2 %v1371_v21  ;;  %427 = vmatpush.msrb.mxu0 %v1309_v1 }
  0x1e   :  { %270 = vmatpush.msra.mxu3 %v1390_v26  ;;  %165 = vmatpush.msrb.mxu1 %v67_v28 }
  0x1f   :  { %251 = vmatpush.msra.mxu2 %v1381_v24  ;;  %428 = vmatpush.msrb.mxu0 %v1312_v2 }
  0x20   :  { %271 = vmatpush.msra.mxu3 %v1401_v29  ;;  %166 = vmatpush.msrb.mxu1 %v65_v31  ;;  %v57_v31 = vld [vmem:[%s1789_s0 + $0x8] sm:$0xff] }
  0x21   :  { %252 = vmatpush.msra.mxu2 %v1393_v27  ;;  %1045 = vmatmul.msk.f32.vlgmr.msrb.gmra.mxu1 %vm78_vm1, %v56_v17 }
  0x22   :  { %272 = vmatpush.msra.mxu3 %v1411_v32  ;;  %429 = vmatpush.msrb.mxu0 %v1319_v5 }
  0x23   :  { %253 = vmatpush.msra.mxu2 %v1403_v30  ;;  %446 = vmatpush.msra.mxu1 %v1315_v3 }
  0x24   :  { %273 = vmatpush.msra.mxu3 %v1418_v34  ;;  %430 = vmatpush.msrb.mxu0 %v1325_v7 }
  0x25   :  { %254 = vmatpush.msra.mxu2 %v1413_v33  ;;  %447 = vmatpush.msra.mxu1 %v1317_v4 }
  0x26   :  { %274 = vmatpush.msra.mxu3 %v1425_v36  ;;  %431 = vmatpush.msrb.mxu0 %v1338_v11 }
  0x27   :  { %255 = vmatpush.msra.mxu2 %v1420_v35  ;;  %448 = vmatpush.msra.mxu1 %v1323_v6 }
  0x28   :  { %275 = vmatpush.msra.mxu3 %v1433_v38  ;;  %432 = vmatpush.msrb.mxu0 %v1348_v14 }
  0x29   :  { %256 = vmatpush.msra.mxu2 %v1428_v37  ;;  %449 = vmatpush.msra.mxu1 %v1332_v9 }
  0x2a   :  { %276 = vmatpush.msra.mxu3 %v1441_v40  ;;  %433 = vmatpush.msrb.mxu0 %v1360_v18 }
  0x2b   :  { %257 = vmatpush.msra.mxu2 %v1436_v39  ;;  %450 = vmatpush.msra.mxu1 %v1346_v13 }
  0x2c   :  { %258 = vmatmul.f32.vlgmr.msra.gmra.mxu2 %v1263_v42  ;;  %277 = vmatpush.msra.mxu3 %v1447_v41 }
  0x2d   :  { %334 = vmatpush.msrb.mxu2 %v1307_v0  ;;  %278 = vmatmul.f32.vlgmr.msra.gmra.mxu3 %v1263_v42 }
  0x2e   :  { %354 = vmatpush.msrb.mxu3 %v1315_v3  ;;  %434 = vmatpush.msrb.mxu0 %v1371_v21 }
  0x2f   :  { %335 = vmatpush.msrb.mxu2 %v1309_v1  ;;  %451 = vmatpush.msra.mxu1 %v1355_v16 }
  0x30   :  { %355 = vmatpush.msrb.mxu3 %v1317_v4  ;;  %435 = vmatpush.msrb.mxu0 %v1381_v24 }
  0x31   :  { %336 = vmatpush.msrb.mxu2 %v1312_v2  ;;  %452 = vmatpush.msra.mxu1 %v1364_v19 }
  0x32   :  { %356 = vmatpush.msrb.mxu3 %v1323_v6  ;;  %436 = vmatpush.msrb.mxu0 %v1393_v27 }
  0x33   :  { %337 = vmatpush.msrb.mxu2 %v1319_v5  ;;  %453 = vmatpush.msra.mxu1 %v1379_v23 }
  0x34   :  { %357 = vmatpush.msrb.mxu3 %v1332_v9  ;;  %437 = vmatpush.msrb.mxu0 %v1403_v30 }
  0x35   :  { %338 = vmatpush.msrb.mxu2 %v1325_v7  ;;  %454 = vmatpush.msra.mxu1 %v1390_v26 }
  0x36   :  { %358 = vmatpush.msrb.mxu3 %v1346_v13  ;;  %438 = vmatpush.msrb.mxu0 %v1413_v33 }
  0x37   :  { %339 = vmatpush.msrb.mxu2 %v1338_v11  ;;  %455 = vmatpush.msra.mxu1 %v1401_v29 }
  0x38   :  { %359 = vmatpush.msrb.mxu3 %v1355_v16  ;;  %439 = vmatpush.msrb.mxu0 %v1420_v35 }
  0x39   :  { %340 = vmatpush.msrb.mxu2 %v1348_v14  ;;  %456 = vmatpush.msra.mxu1 %v1411_v32 }
  0x3a   :  { %360 = vmatpush.msrb.mxu3 %v1364_v19  ;;  %440 = vmatpush.msrb.mxu0 %v1428_v37 }
  0x3b   :  { %341 = vmatpush.msrb.mxu2 %v1360_v18  ;;  %457 = vmatpush.msra.mxu1 %v1418_v34 }
  0x3c   :  { %361 = vmatpush.msrb.mxu3 %v1379_v23  ;;  %441 = vmatpush.msrb.mxu0 %v1436_v39 }
  0x3d   :  { %342 = vmatpush.msrb.mxu2 %v1371_v21  ;;  %458 = vmatpush.msra.mxu1 %v1425_v36 }
  0x3e   :  { %362 = vmatpush.msrb.mxu3 %v1390_v26  ;;  %610 = vmatpush.msra.mxu0 %v1307_v0 }
  0x3f   :  { %343 = vmatpush.msrb.mxu2 %v1381_v24  ;;  %459 = vmatpush.msra.mxu1 %v1433_v38 }
  0x40   :  { %363 = vmatpush.msrb.mxu3 %v1401_v29  ;;  %611 = vmatpush.msra.mxu0 %v1309_v1 }
  0x41   :  { %344 = vmatpush.msrb.mxu2 %v1393_v27  ;;  %460 = vmatpush.msra.mxu1 %v1441_v40 }
  0x42   :  { %364 = vmatpush.msrb.mxu3 %v1411_v32  ;;  %612 = vmatpush.msra.mxu0 %v1312_v2 }
  0x43   :  { %345 = vmatpush.msrb.mxu2 %v1403_v30  ;;  %461 = vmatpush.msra.mxu1 %v1447_v41 }
  0x44   :  { %365 = vmatpush.msrb.mxu3 %v1418_v34  ;;  %613 = vmatpush.msra.mxu0 %v1319_v5 }
  0x45   :  { %346 = vmatpush.msrb.mxu2 %v1413_v33  ;;  %630 = vmatpush.msrb.mxu1 %v1315_v3 }
  0x46   :  { %366 = vmatpush.msrb.mxu3 %v1425_v36  ;;  %614 = vmatpush.msra.mxu0 %v1325_v7 }
  0x47   :  { %347 = vmatpush.msrb.mxu2 %v1420_v35  ;;  %631 = vmatpush.msrb.mxu1 %v1317_v4 }
  0x48   :  { %367 = vmatpush.msrb.mxu3 %v1433_v38  ;;  %615 = vmatpush.msra.mxu0 %v1338_v11 }
  0x49   :  { %348 = vmatpush.msrb.mxu2 %v1428_v37  ;;  %632 = vmatpush.msrb.mxu1 %v1323_v6 }
  0x4a   :  { %368 = vmatpush.msrb.mxu3 %v1441_v40  ;;  %616 = vmatpush.msra.mxu0 %v1348_v14 }
  0x4b   :  { %349 = vmatpush.msrb.mxu2 %v1436_v39  ;;  %633 = vmatpush.msrb.mxu1 %v1332_v9 }
  0x4c   :  { %369 = vmatpush.msrb.mxu3 %v1447_v41  ;;  %617 = vmatpush.msra.mxu0 %v1360_v18 }
  0x4d   :  { %518 = vmatpush.msra.mxu2 %v1307_v0  ;;  %634 = vmatpush.msrb.mxu1 %v1346_v13 }
  0x4e   :  { %538 = vmatpush.msra.mxu3 %v1315_v3  ;;  %618 = vmatpush.msra.mxu0 %v1371_v21 }
  0x4f   :  { %519 = vmatpush.msra.mxu2 %v1309_v1  ;;  %635 = vmatpush.msrb.mxu1 %v1355_v16 }
  0x50   :  { %539 = vmatpush.msra.mxu3 %v1317_v4  ;;  %619 = vmatpush.msra.mxu0 %v1381_v24 }
  0x51   :  { %520 = vmatpush.msra.mxu2 %v1312_v2  ;;  %636 = vmatpush.msrb.mxu1 %v1364_v19 }
  0x52   :  { %540 = vmatpush.msra.mxu3 %v1323_v6  ;;  %620 = vmatpush.msra.mxu0 %v1393_v27 }
  0x53   :  { %521 = vmatpush.msra.mxu2 %v1319_v5  ;;  %637 = vmatpush.msrb.mxu1 %v1379_v23 }
  0x54   :  { %541 = vmatpush.msra.mxu3 %v1332_v9  ;;  %621 = vmatpush.msra.mxu0 %v1403_v30 }
  0x55   :  { %522 = vmatpush.msra.mxu2 %v1325_v7  ;;  %638 = vmatpush.msrb.mxu1 %v1390_v26 }
  0x56   :  { %542 = vmatpush.msra.mxu3 %v1346_v13  ;;  %622 = vmatpush.msra.mxu0 %v1413_v33 }
  0x57   :  { %523 = vmatpush.msra.mxu2 %v1338_v11  ;;  %639 = vmatpush.msrb.mxu1 %v1401_v29 }
  0x58   :  { %543 = vmatpush.msra.mxu3 %v1355_v16  ;;  %623 = vmatpush.msra.mxu0 %v1420_v35 }
  0x59   :  { %524 = vmatpush.msra.mxu2 %v1348_v14  ;;  %640 = vmatpush.msrb.mxu1 %v1411_v32 }
  0x5a   :  { %544 = vmatpush.msra.mxu3 %v1364_v19  ;;  %624 = vmatpush.msra.mxu0 %v1428_v37 }
  0x5b   :  { %525 = vmatpush.msra.mxu2 %v1360_v18  ;;  %641 = vmatpush.msrb.mxu1 %v1418_v34 }
  0x5c   :  { %545 = vmatpush.msra.mxu3 %v1379_v23  ;;  %625 = vmatpush.msra.mxu0 %v1436_v39 }
  0x5d   :  { %526 = vmatpush.msra.mxu2 %v1371_v21  ;;  %642 = vmatpush.msrb.mxu1 %v1425_v36 }
  0x5e   :  { %546 = vmatpush.msra.mxu3 %v1390_v26  ;;  %1037 = vmatmul.msk.f32.gmra.mxu0 %vm78_vm1, %v57_v31 }
  0x5f   :  { %527 = vmatpush.msra.mxu2 %v1381_v24  ;;  %643 = vmatpush.msrb.mxu1 %v1433_v38 }
  0x60   :  { %547 = vmatpush.msra.mxu3 %v1401_v29  ;;  %1046 = vmatmul.msk.f32.gmra.mxu1 %vm78_vm1, %v57_v31 }
  0x61   :  { %528 = vmatpush.msra.mxu2 %v1393_v27  ;;  %644 = vmatpush.msrb.mxu1 %v1441_v40 }
  0x62   :  { %548 = vmatpush.msra.mxu3 %v1411_v32 }
  0x63   :  { %529 = vmatpush.msra.mxu2 %v1403_v30  ;;  %645 = vmatpush.msrb.mxu1 %v1447_v41 }
  0x64   :  { %549 = vmatpush.msra.mxu3 %v1418_v34 }
  0x65   :  { %530 = vmatpush.msra.mxu2 %v1413_v33 }
  0x66   :  { %550 = vmatpush.msra.mxu3 %v1425_v36 }
  0x67   :  { %531 = vmatpush.msra.mxu2 %v1420_v35 }
  0x68   :  { %551 = vmatpush.msra.mxu3 %v1433_v38 }
  0x69   :  { %532 = vmatpush.msra.mxu2 %v1428_v37 }
  0x6a   :  { %552 = vmatpush.msra.mxu3 %v1441_v40 }
  0x6b   :  { %533 = vmatpush.msra.mxu2 %v1436_v39 }
  0x6c   :  { %553 = vmatpush.msra.mxu3 %v1447_v41 }
  0x94   :  { %v127_v45 = vpop.f32.mrf.mxu0 }
  0x95   :  { %v128_v46 = vadd.f32 %v127_v45, %v1573_v44 }
  0x96   :  { %v1576_v51 = vpop.f32.mrf.mxu1 }
  0x9e   :  { %v168_v55 = vpop.f32.mrf.mxu1 }
  0x9f   :  { %v169_v58 = vadd.f32 %v168_v55, %v1578_v54 }
  0xaf   :  { %v259_v47 = vpop.f32.mrf.mxu2 }
  0xb0   :  { %v282_v48 = vadd.f32 %v259_v47, %v128_v46  ;;  %v279_v60 = vpop.f32.mrf.mxu3 }
  0xb1   :  { %v283_v8 = vadd.f32 %v279_v60, %v169_v58 }
  0xb2   :  { %v1053_v49 = vmul.f32 -1.442695, %v282_v48 }
  0xb3   :  { %v1054_v22 = vmul.f32 -1.442695, %v283_v8 }
  0xb4   :  { %1083 = vpow2.f32 %v1053_v49 }
  0xba   :  { %v1084_v50 = vpop.eup %1083 }
  0xbb   :  { %v287_v52 = vadd.f32 1.0, %v1084_v50 }
  0xbd   :  { %1085 = vrcp.f32 %v287_v52  ;;  %v299_v59 = vand.u32 2147483648, %v287_v52  ;;  %v297_v62 = vand.u32 2147483647, %v287_v52  ;;  %vm293_vm3 = vweird.f32 %v287_v52 }
  0xbe   :  { %1087 = vtanh.f32 %v283_v8 }
  0xbf   :  { %v300_v10 = vor.u32 1.1754944e-38, %v299_v59  ;;  %vm298_vm5 = vcmp.eq.f32.partialorder %v297_v62, 8.507059e+37  ;;  %1089 = vpow2.f32 %v1054_v22 }
  0xc3   :  { %v1086_v53 = vpop.eup %1085 }
  0xc4   :  { %v289_v56 = vmul.f32 %v1086_v53, %v287_v52  ;;  %vm294_vm2 = vweird.f32 %v1086_v53  ;;  %v1088_v17 = vpop.eup %1087 }
  0xc5   :  { %vm295_vm4 = vmor %vm293_vm3, %vm294_vm2  ;;  %v1090_v25 = vpop.eup %1089 }
  0xc6   :  { %v290_v57 = vsub.f32 1.0, %v289_v56  ;;  %v306_v28 = vadd.f32 1.0, %v1090_v25  ;;  %v59_v25 = vld [vmem:[%s1789_s0 + $0x18] sm:$0xff] }
  0xc8   :  { %v291_v61 = vmul.f32 %v1086_v53, %v290_v57  ;;  %1091 = vrcp.f32 %v306_v28  ;;  %vm312_vm6 = vweird.f32 %v306_v28  ;;  %v316_v56 = vand.u32 2147483647, %v306_v28 }
  0xca   :  { %v292_v63 = vadd.f32 %v1086_v53, %v291_v61  ;;  %vm317_vm9 = vcmp.eq.f32.partialorder %v316_v56, 8.507059e+37 }
  0xcc   :  { %v296_v12 = vsel %vm295_vm4, %v1086_v53, %v292_v63  ;;  %v318_v53 = vand.u32 2147483648, %v306_v28 }
  0xcd   :  { %v301_v15 = vsel %vm298_vm5, %v300_v10, %v296_v12 }
  0xce   :  { %323 = vrot.lane.b32.xlu0 %v301_v15, %s1264_s3  ;;  %v1092_v42 = vpop.eup %1091  ;;  %v319_v57 = vor.u32 1.1754944e-38, %v318_v53 }
  0xcf   :  { %v308_v45 = vmul.f32 %v1092_v42, %v306_v28  ;;  %vm313_vm7 = vweird.f32 %v1092_v42 }
  0xd0   :  { %vm314_vm8 = vmor %vm312_vm6, %vm313_vm7 }
  0xd1   :  { %v309_v46 = vsub.f32 1.0, %v308_v45 }
  0xd3   :  { %v310_v48 = vmul.f32 %v1092_v42, %v309_v46 }
  0xd5   :  { %v311_v55 = vadd.f32 %v1092_v42, %v310_v48 }
  0xd6   :  { %325 = vrot.lane.b32.xlu0 %v1088_v17, %s1264_s3 }
  0xd7   :  { %v315_v58 = vsel %vm314_vm8, %v1092_v42, %v311_v55 }
  0xd8   :  { %v320_v60 = vsel %vm317_vm9, %v319_v57, %v315_v58  ;;  %v61_v58 = vld [vmem:[%s1789_s0 + $0x28] sm:$0xff] }
  0xdb   :  { %v130_v62 = vpop.f32.mrf.mxu0 }
  0xdc   :  { %v131_v63 = vadd.f32 %v130_v62, %v1573_v44 }
  0xdd   :  { %v171_v31 = vpop.f32.mrf.mxu1 }
  0xde   :  { %v172_v46 = vadd.f32 %v171_v31, %v1578_v54 }
 0x140   :  { %v324_v43 = vpop.permute.xlu0 %323 }
 0x141   :  { %v327_v49 = vmul.f32 0.0, %v324_v43  ;;  %v60_v43 = vld [vmem:[%s1789_s0 + $0x20] sm:$0xff] }
 0x148   :  { %v326_v47 = vpop.permute.xlu0 %325 }
 0x149   :  { %v328_v50 = vmul.f32 %v326_v47, %v301_v15  ;;  %v58_v15 = vld [vmem:[%s1789_s0 + $0x10] sm:$0xff] }
 0x14a   :  { %1047 = vmatmul.msk.f32.gmra.mxu1 %vm78_vm1, %v58_v15  ;;  %1038 = vmatmul.msk.f32.gmra.mxu0 %vm78_vm1, %v58_v15 }
 0x14b   :  { %v1588_v52 = vadd.f32 %v328_v50, %v327_v49 }
 0x14d   :  { %1093 = vtanh.f32 %v1588_v52 }
 0x152   :  { %1048 = vmatmul.msk.f32.gmra.mxu1 %vm78_vm1, %v59_v25  ;;  %1039 = vmatmul.msk.f32.gmra.mxu0 %vm78_vm1, %v59_v25 }
 0x153   :  { %v1094_v59 = vpop.eup %1093 }
 0x154   :  { %v331_v61 = vmul.f32 %v1094_v59, %v320_v60 }
 0x156   :  { %350 = vmatmul.f32.vlgmr.msrb.gmra.mxu2 %v331_v61  ;;  %370 = vmatmul.f32.vlgmr.msrb.gmra.mxu3 %v331_v61  ;;  %v62_v61 = vld [vmem:[%s1789_s0 + $0x30] sm:$0xff] }
 0x157   :  { %702 = vmatpush.msrb.mxu2 %v1307_v0  ;;  %722 = vmatpush.msrb.mxu3 %v1315_v3 }
 0x159   :  { %703 = vmatpush.msrb.mxu2 %v1309_v1  ;;  %723 = vmatpush.msrb.mxu3 %v1317_v4 }
 0x15a   :  { %1049 = vmatmul.msk.f32.gmra.mxu1 %vm78_vm1, %v60_v43  ;;  %1040 = vmatmul.msk.f32.gmra.mxu0 %vm78_vm1, %v60_v43 }
 0x15b   :  { %704 = vmatpush.msrb.mxu2 %v1312_v2  ;;  %724 = vmatpush.msrb.mxu3 %v1323_v6 }
 0x15d   :  { %705 = vmatpush.msrb.mxu2 %v1319_v5  ;;  %725 = vmatpush.msrb.mxu3 %v1332_v9 }
 0x15f   :  { %706 = vmatpush.msrb.mxu2 %v1325_v7  ;;  %726 = vmatpush.msrb.mxu3 %v1346_v13 }
 0x161   :  { %707 = vmatpush.msrb.mxu2 %v1338_v11  ;;  %727 = vmatpush.msrb.mxu3 %v1355_v16 }
 0x162   :  { %1050 = vmatmul.msk.f32.gmra.mxu1 %vm78_vm1, %v61_v58  ;;  %1041 = vmatmul.msk.f32.gmra.mxu0 %vm78_vm1, %v61_v58 }
 0x163   :  { %708 = vmatpush.msrb.mxu2 %v1348_v14  ;;  %728 = vmatpush.msrb.mxu3 %v1364_v19 }
 0x165   :  { %709 = vmatpush.msrb.mxu2 %v1360_v18  ;;  %729 = vmatpush.msrb.mxu3 %v1379_v23 }
 0x167   :  { %710 = vmatpush.msrb.mxu2 %v1371_v21  ;;  %730 = vmatpush.msrb.mxu3 %v1390_v26 }
 0x169   :  { %711 = vmatpush.msrb.mxu2 %v1381_v24  ;;  %731 = vmatpush.msrb.mxu3 %v1401_v29 }
 0x16a   :  { %1051 = vmatmul.msk.f32.gmra.mxu1 %vm78_vm1, %v62_v61  ;;  %1042 = vmatmul.msk.f32.gmra.mxu0 %vm78_vm1, %v62_v61 }
 0x16b   :  { %712 = vmatpush.msrb.mxu2 %v1393_v27  ;;  %732 = vmatpush.msrb.mxu3 %v1411_v32 }
 0x16d   :  { %713 = vmatpush.msrb.mxu2 %v1403_v30  ;;  %733 = vmatpush.msrb.mxu3 %v1418_v34 }
 0x16f   :  { %714 = vmatpush.msrb.mxu2 %v1413_v33  ;;  %734 = vmatpush.msrb.mxu3 %v1425_v36 }
 0x171   :  { %715 = vmatpush.msrb.mxu2 %v1420_v35  ;;  %735 = vmatpush.msrb.mxu3 %v1433_v38 }
 0x172   :  { %1052 = vmatmul.msk.f32.gmra.mxu1 %vm78_vm1, %v1369_v20 }
 0x173   :  { %716 = vmatpush.msrb.mxu2 %v1428_v37  ;;  %736 = vmatpush.msrb.mxu3 %v1441_v40 }
 0x175   :  { %717 = vmatpush.msrb.mxu2 %v1436_v39  ;;  %737 = vmatpush.msrb.mxu3 %v1447_v41 }
 0x1d9   :  { %v351_v8 = vpop.f32.mrf.mxu2  ;;  %v371_v48 = vpop.f32.mrf.mxu3 }
 0x1da   :  { %v374_v10 = vadd.f32 %v351_v8, %v131_v63  ;;  %v375_v55 = vadd.f32 %v371_v48, %v172_v46 }
 0x1dc   :  { %v1055_v12 = vmul.f32 -1.442695, %v374_v10  ;;  %v1056_v62 = vmul.f32 -1.442695, %v375_v55 }
 0x1de   :  { %1095 = vpow2.f32 %v1055_v12 }
 0x1e4   :  { %v1096_v17 = vpop.eup %1095 }
 0x1e5   :  { %v379_v22 = vadd.f32 1.0, %v1096_v17 }
 0x1e7   :  { %1097 = vrcp.f32 %v379_v22  ;;  %v391_v47 = vand.u32 2147483648, %v379_v22  ;;  %v389_v50 = vand.u32 2147483647, %v379_v22  ;;  %vm385_vm11 = vweird.f32 %v379_v22 }
 0x1e8   :  { %1099 = vtanh.f32 %v375_v55  ;;  %v174_v55 = vpop.f32.mrf.mxu1 }
 0x1e9   :  { %v392_v56 = vor.u32 1.1754944e-38, %v391_v47  ;;  %vm390_vm13 = vcmp.eq.f32.partialorder %v389_v50, 8.507059e+37  ;;  %1101 = vpow2.f32 %v1056_v62 }
 0x1ed   :  { %v1098_v28 = vpop.eup %1097 }
 0x1ee   :  { %v381_v42 = vmul.f32 %v1098_v28, %v379_v22  ;;  %vm386_vm10 = vweird.f32 %v1098_v28  ;;  %v1100_v60 = vpop.eup %1099 }
 0x1ef   :  { %vm387_vm12 = vmor %vm385_vm11, %vm386_vm10  ;;  %v1102_v63 = vpop.eup %1101 }
 0x1f0   :  { %v382_v45 = vsub.f32 1.0, %v381_v42  ;;  %v398_v8 = vadd.f32 1.0, %v1102_v63 }
 0x1f2   :  { %v383_v49 = vmul.f32 %v1098_v28, %v382_v45  ;;  %1103 = vrcp.f32 %v398_v8  ;;  %v410_v45 = vand.u32 2147483648, %v398_v8  ;;  %vm404_vm15 = vweird.f32 %v398_v8 }
 0x1f3   :  { %v408_v20 = vand.u32 2147483647, %v398_v8 }
 0x1f4   :  { %v384_v53 = vadd.f32 %v1098_v28, %v383_v49  ;;  %v411_v47 = vor.u32 1.1754944e-38, %v410_v45 }
 0x1f5   :  { %vm409_vm1 = vcmp.eq.f32.partialorder %v408_v20, 8.507059e+37 }
 0x1f6   :  { %v388_v57 = vsel %vm387_vm12, %v1098_v28, %v384_v53 }
 0x1f7   :  { %v393_v59 = vsel %vm390_vm13, %v392_v56, %v388_v57  ;;  %v1694_v57 = vpop.f32.mrf.mxu1 }
 0x1f8   :  { %415 = vrot.lane.b32.xlu1 %v393_v59, %s1264_s3  ;;  %v1104_v10 = vpop.eup %1103 }
 0x1f9   :  { %v400_v15 = vmul.f32 %v1104_v10, %v398_v8  ;;  %vm405_vm14 = vweird.f32 %v1104_v10 }
 0x1fa   :  { %vm406_vm0 = vmor %vm404_vm15, %vm405_vm14 }
 0x1fb   :  { %v401_v17 = vsub.f32 1.0, %v400_v15 }
 0x1fd   :  { %v402_v25 = vmul.f32 %v1104_v10, %v401_v17 }
 0x1ff   :  { %v403_v43 = vadd.f32 %v1104_v10, %v402_v25 }
 0x200   :  { %417 = vrot.lane.b32.xlu1 %v1100_v60, %s1264_s3 }
 0x201   :  { %v407_v46 = vsel %vm406_vm0, %v1104_v10, %v403_v43 }
 0x202   :  { %v412_v49 = vsel %vm409_vm1, %v411_v47, %v407_v46  ;;  %v175_v47 = vadd.f32 %v174_v55, %v1578_v54 }
 0x26a   :  { %v416_v12 = vpop.permute.xlu1 %415 }
 0x26b   :  { %v419_v28 = vmul.f32 %v416_v12, %v1588_v52  ;;  %v133_v52 = vpop.f32.mrf.mxu0 }
 0x26c   :  { %v134_v62 = vadd.f32 %v133_v52, %v1573_v44 }
 0x272   :  { %v418_v22 = vpop.permute.xlu1 %417 }
 0x273   :  { %v420_v31 = vmul.f32 %v418_v22, %v393_v59  ;;  %v1690_v53 = vpop.f32.mrf.mxu0  ;;  %v1698_v59 = vpop.f32.mrf.mxu1 }
 0x275   :  { %v1655_v42 = vadd.f32 %v420_v31, %v419_v28 }
 0x277   :  { %1105 = vtanh.f32 %v1655_v42 }
 0x27b   :  { %v1692_v56 = vpop.f32.mrf.mxu0  ;;  %v1702_v61 = vpop.f32.mrf.mxu1 }
 0x27d   :  { %v1106_v48 = vpop.eup %1105 }
 0x27e   :  { %v423_v50 = vmul.f32 %v1106_v48, %v412_v49 }
 0x280   :  { %442 = vmatmul.f32.vlgmr.msrb.gmra.mxu0 %v423_v50  ;;  %462 = vmatmul.f32.vlgmr.msra.gmra.mxu1 %v423_v50 }
 0x281   :  { %794 = vmatpush.msrb.mxu0 %v1307_v0  ;;  %814 = vmatpush.msra.mxu1 %v1315_v3 }
 0x283   :  { %795 = vmatpush.msrb.mxu0 %v1309_v1  ;;  %815 = vmatpush.msra.mxu1 %v1317_v4  ;;  %v1696_v58 = vpop.f32.mrf.mxu0  ;;  %v1705_v12 = vpop.f32.mrf.mxu1 }
 0x285   :  { %796 = vmatpush.msrb.mxu0 %v1312_v2  ;;  %816 = vmatpush.msra.mxu1 %v1323_v6 }
 0x287   :  { %797 = vmatpush.msrb.mxu0 %v1319_v5  ;;  %817 = vmatpush.msra.mxu1 %v1332_v9 }
 0x289   :  { %798 = vmatpush.msrb.mxu0 %v1325_v7  ;;  %818 = vmatpush.msra.mxu1 %v1346_v13 }
 0x28b   :  { %799 = vmatpush.msrb.mxu0 %v1338_v11  ;;  %819 = vmatpush.msra.mxu1 %v1355_v16  ;;  %v1700_v60 = vpop.f32.mrf.mxu0  ;;  %v1707_v22 = vpop.f32.mrf.mxu1 }
 0x28d   :  { %800 = vmatpush.msrb.mxu0 %v1348_v14  ;;  %820 = vmatpush.msra.mxu1 %v1364_v19 }
 0x28f   :  { %801 = vmatpush.msrb.mxu0 %v1360_v18  ;;  %821 = vmatpush.msra.mxu1 %v1379_v23 }
 0x291   :  { %802 = vmatpush.msrb.mxu0 %v1371_v21  ;;  %822 = vmatpush.msra.mxu1 %v1390_v26 }
 0x293   :  { %803 = vmatpush.msrb.mxu0 %v1381_v24  ;;  %823 = vmatpush.msra.mxu1 %v1401_v29 }
 0x295   :  { %804 = vmatpush.msrb.mxu0 %v1393_v27  ;;  %824 = vmatpush.msra.mxu1 %v1411_v32 }
 0x297   :  { %805 = vmatpush.msrb.mxu0 %v1403_v30  ;;  %825 = vmatpush.msra.mxu1 %v1418_v34 }
 0x299   :  { %806 = vmatpush.msrb.mxu0 %v1413_v33  ;;  %826 = vmatpush.msra.mxu1 %v1425_v36 }
 0x29b   :  { %807 = vmatpush.msrb.mxu0 %v1420_v35  ;;  %827 = vmatpush.msra.mxu1 %v1433_v38 }
 0x29d   :  { %808 = vmatpush.msrb.mxu0 %v1428_v37  ;;  %828 = vmatpush.msra.mxu1 %v1441_v40 }
 0x29f   :  { %809 = vmatpush.msrb.mxu0 %v1436_v39  ;;  %829 = vmatpush.msra.mxu1 %v1447_v41 }
 0x2fd   :  { %v443_v63 = vpop.f32.mrf.mxu0  ;;  %v463_v45 = vpop.f32.mrf.mxu1 }
 0x2fe   :  { %v466_v8 = vadd.f32 %v443_v63, %v134_v62  ;;  %v467_v49 = vadd.f32 %v463_v45, %v175_v47 }
 0x300   :  { %v1057_v10 = vmul.f32 -1.442695, %v466_v8  ;;  %v1058_v8 = vmul.f32 -1.442695, %v467_v49 }
 0x302   :  { %1107 = vpow2.f32 %v1057_v10 }
 0x308   :  { %v1108_v15 = vpop.eup %1107 }
 0x309   :  { %v471_v17 = vadd.f32 1.0, %v1108_v15 }
 0x30b   :  { %1109 = vrcp.f32 %v471_v17  ;;  %v483_v43 = vand.u32 2147483648, %v471_v17  ;;  %v481_v46 = vand.u32 2147483647, %v471_v17  ;;  %vm477_vm3 = vweird.f32 %v471_v17 }
 0x30c   :  { %1111 = vtanh.f32 %v467_v49 }
 0x30d   :  { %v484_v50 = vor.u32 1.1754944e-38, %v483_v43  ;;  %vm482_vm5 = vcmp.eq.f32.partialorder %v481_v46, 8.507059e+37  ;;  %1113 = vpow2.f32 %v1058_v8 }
 0x311   :  { %v1110_v25 = vpop.eup %1109 }
 0x312   :  { %v473_v28 = vmul.f32 %v1110_v25, %v471_v17  ;;  %vm478_vm2 = vweird.f32 %v1110_v25  ;;  %v1112_v63 = vpop.eup %1111 }
 0x313   :  { %vm479_vm4 = vmor %vm477_vm3, %vm478_vm2  ;;  %v1114_v10 = vpop.eup %1113 }
 0x314   :  { %v474_v31 = vsub.f32 1.0, %v473_v28  ;;  %v490_v15 = vadd.f32 1.0, %v1114_v10 }
 0x316   :  { %v475_v20 = vmul.f32 %v1110_v25, %v474_v31  ;;  %1115 = vrcp.f32 %v490_v15  ;;  %vm496_vm7 = vweird.f32 %v490_v15  ;;  %v500_v49 = vand.u32 2147483647, %v490_v15 }
 0x318   :  { %v476_v48 = vadd.f32 %v1110_v25, %v475_v20  ;;  %vm501_vm9 = vcmp.eq.f32.partialorder %v500_v49, 8.507059e+37 }
 0x31a   :  { %v480_v52 = vsel %vm479_vm4, %v1110_v25, %v476_v48  ;;  %v502_v48 = vand.u32 2147483648, %v490_v15 }
 0x31b   :  { %v485_v62 = vsel %vm482_vm5, %v484_v50, %v480_v52 }
 0x31c   :  { %507 = vrot.lane.b32.xlu2 %v485_v62, %s1264_s3  ;;  %v1116_v55 = vpop.eup %1115  ;;  %v503_v52 = vor.u32 1.1754944e-38, %v502_v48 }
 0x31d   :  { %v492_v28 = vmul.f32 %v1116_v55, %v490_v15  ;;  %vm497_vm6 = vweird.f32 %v1116_v55 }
 0x31e   :  { %vm498_vm8 = vmor %vm496_vm7, %vm497_vm6 }
 0x31f   :  { %v493_v31 = vsub.f32 1.0, %v492_v28 }
 0x321   :  { %v494_v43 = vmul.f32 %v1116_v55, %v493_v31  ;;  %v181_v31 = vadd.f32 %v1698_v59, %v1578_v54 }
 0x323   :  { %v495_v47 = vadd.f32 %v1116_v55, %v494_v43 }
 0x324   :  { %509 = vrot.lane.b32.xlu2 %v1112_v63, %s1264_s3 }
 0x325   :  { %v499_v50 = vsel %vm498_vm8, %v1116_v55, %v495_v47 }
 0x326   :  { %v504_v8 = vsel %vm501_vm9, %v503_v52, %v499_v50 }
 0x376   :  { %v508_v17 = vpop.permute.xlu2 %507 }
 0x377   :  { %v511_v25 = vmul.f32 %v508_v17, %v1655_v42 }
 0x37e   :  { %v510_v45 = vpop.permute.xlu2 %509 }
 0x37f   :  { %v512_v20 = vmul.f32 %v510_v45, %v485_v62  ;;  %v140_v45 = vadd.f32 %v1692_v56, %v1573_v44 }
 0x381   :  { %v1713_v46 = vadd.f32 %v512_v20, %v511_v25 }
 0x383   :  { %1117 = vtanh.f32 %v1713_v46 }
 0x389   :  { %v1118_v63 = vpop.eup %1117 }
 0x38a   :  { %v515_v10 = vmul.f32 %v1118_v63, %v504_v8 }
 0x38c   :  { %534 = vmatmul.f32.vlgmr.msra.gmra.mxu2 %v515_v10  ;;  %554 = vmatmul.f32.vlgmr.msra.gmra.mxu3 %v515_v10 }
 0x38d   :  { %886 = vmatpush.msra.mxu2 %v1307_v0  ;;  %906 = vmatpush.msra.mxu3 %v1315_v3  ;;  %v178_v0 = vadd.f32 %v1694_v57, %v1578_v54 }
 0x38f   :  { %887 = vmatpush.msra.mxu2 %v1309_v1  ;;  %907 = vmatpush.msra.mxu3 %v1317_v4  ;;  %v137_v1 = vadd.f32 %v1690_v53, %v1573_v44 }
 0x391   :  { %888 = vmatpush.msra.mxu2 %v1312_v2  ;;  %908 = vmatpush.msra.mxu3 %v1323_v6 }
 0x393   :  { %889 = vmatpush.msra.mxu2 %v1319_v5  ;;  %909 = vmatpush.msra.mxu3 %v1332_v9 }
 0x395   :  { %890 = vmatpush.msra.mxu2 %v1325_v7  ;;  %910 = vmatpush.msra.mxu3 %v1346_v13 }
 0x397   :  { %891 = vmatpush.msra.mxu2 %v1338_v11  ;;  %911 = vmatpush.msra.mxu3 %v1355_v16 }
 0x399   :  { %892 = vmatpush.msra.mxu2 %v1348_v14  ;;  %912 = vmatpush.msra.mxu3 %v1364_v19 }
 0x39b   :  { %893 = vmatpush.msra.mxu2 %v1360_v18  ;;  %913 = vmatpush.msra.mxu3 %v1379_v23 }
 0x39d   :  { %894 = vmatpush.msra.mxu2 %v1371_v21  ;;  %914 = vmatpush.msra.mxu3 %v1390_v26 }
 0x39f   :  { %895 = vmatpush.msra.mxu2 %v1381_v24  ;;  %915 = vmatpush.msra.mxu3 %v1401_v29 }
 0x3a1   :  { %896 = vmatpush.msra.mxu2 %v1393_v27  ;;  %916 = vmatpush.msra.mxu3 %v1411_v32 }
 0x3a3   :  { %897 = vmatpush.msra.mxu2 %v1403_v30  ;;  %917 = vmatpush.msra.mxu3 %v1418_v34 }
 0x3a5   :  { %898 = vmatpush.msra.mxu2 %v1413_v33  ;;  %918 = vmatpush.msra.mxu3 %v1425_v36 }
 0x3a7   :  { %899 = vmatpush.msra.mxu2 %v1420_v35  ;;  %919 = vmatpush.msra.mxu3 %v1433_v38 }
 0x3a9   :  { %900 = vmatpush.msra.mxu2 %v1428_v37  ;;  %920 = vmatpush.msra.mxu3 %v1441_v40 }
 0x3ab   :  { %901 = vmatpush.msra.mxu2 %v1436_v39  ;;  %921 = vmatpush.msra.mxu3 %v1447_v41 }
 0x40f   :  { %v535_v2 = vpop.f32.mrf.mxu2  ;;  %v555_v3 = vpop.f32.mrf.mxu3 }
 0x410   :  { %v558_v4 = vadd.f32 %v535_v2, %v137_v1  ;;  %v559_v5 = vadd.f32 %v555_v3, %v178_v0 }
 0x412   :  { %v1059_v6 = vmul.f32 -1.442695, %v558_v4  ;;  %1119 = vtanh.f32 %v559_v5  ;;  %v1060_v29 = vmul.f32 -1.442695, %v559_v5 }
 0x414   :  { %1121 = vpow2.f32 %v1059_v6 }
 0x418   :  { %v1120_v7 = vpop.eup %1119 }
 0x419   :  { %601 = vrot.lane.b32.xlu1 %v1120_v7, %s1264_s3 }
 0x41a   :  { %v1122_v9 = vpop.eup %1121 }
 0x41b   :  { %v563_v11 = vadd.f32 1.0, %v1122_v9 }
 0x41d   :  { %1123 = vrcp.f32 %v563_v11  ;;  %v575_v18 = vand.u32 2147483648, %v563_v11  ;;  %v573_v21 = vand.u32 2147483647, %v563_v11  ;;  %vm569_vm11 = vweird.f32 %v563_v11 }
 0x41e   :  { %1125 = vpow2.f32 %v1060_v29 }
 0x41f   :  { %v576_v24 = vor.u32 1.1754944e-38, %v575_v18  ;;  %vm574_vm13 = vcmp.eq.f32.partialorder %v573_v21, 8.507059e+37 }
 0x423   :  { %v1124_v13 = vpop.eup %1123 }
 0x424   :  { %v565_v14 = vmul.f32 %v1124_v13, %v563_v11  ;;  %vm570_vm10 = vweird.f32 %v1124_v13  ;;  %v1126_v30 = vpop.eup %1125 }
 0x425   :  { %vm571_vm12 = vmor %vm569_vm11, %vm570_vm10  ;;  %v582_v32 = vadd.f32 1.0, %v1126_v30 }
 0x426   :  { %v566_v16 = vsub.f32 1.0, %v565_v14 }
 0x427   :  { %1127 = vrcp.f32 %v582_v32  ;;  %v594_v53 = vand.u32 2147483648, %v582_v32  ;;  %vm588_vm15 = vweird.f32 %v582_v32  ;;  %v592_v57 = vand.u32 2147483647, %v582_v32 }
 0x428   :  { %v567_v19 = vmul.f32 %v1124_v13, %v566_v16 }
 0x429   :  { %v595_v15 = vor.u32 1.1754944e-38, %v594_v53  ;;  %vm593_vm1 = vcmp.eq.f32.partialorder %v592_v57, 8.507059e+37 }
 0x42a   :  { %v568_v23 = vadd.f32 %v1124_v13, %v567_v19 }
 0x42c   :  { %v572_v26 = vsel %vm571_vm12, %v1124_v13, %v568_v23 }
 0x42d   :  { %v577_v27 = vsel %vm574_vm13, %v576_v24, %v572_v26  ;;  %v1128_v33 = vpop.eup %1127 }
 0x42e   :  { %599 = vrot.lane.b32.xlu0 %v577_v27, %s1264_s3  ;;  %v584_v34 = vmul.f32 %v1128_v33, %v582_v32  ;;  %vm589_vm14 = vweird.f32 %v1128_v33 }
 0x42f   :  { %vm590_vm0 = vmor %vm588_vm15, %vm589_vm14 }
 0x430   :  { %v585_v35 = vsub.f32 1.0, %v584_v34  ;;  %v184_v34 = vadd.f32 %v1702_v61, %v1578_v54 }
 0x432   :  { %v586_v38 = vmul.f32 %v1128_v33, %v585_v35  ;;  %v143_v35 = vadd.f32 %v1696_v58, %v1573_v44 }
 0x434   :  { %v587_v42 = vadd.f32 %v1128_v33, %v586_v38 }
 0x436   :  { %v591_v62 = vsel %vm590_vm0, %v1128_v33, %v587_v42 }
 0x437   :  { %v596_v28 = vsel %vm593_vm1, %v595_v15, %v591_v62 }
 0x48b   :  { %v602_v36 = vpop.permute.xlu1 %601 }
 0x48c   :  { %v604_v39 = vmul.f32 %v602_v36, %v577_v27 }
 0x4a0   :  { %v600_v37 = vpop.permute.xlu0 %599 }
 0x4a1   :  { %v603_v40 = vmul.f32 %v600_v37, %v1713_v46 }
 0x4a3   :  { %v605_v41 = vadd.f32 %v604_v39, %v603_v40 }
 0x4a5   :  { %1129 = vtanh.f32 %v605_v41 }
 0x4ab   :  { %v1130_v55 = vpop.eup %1129 }
 0x4ac   :  { %v607_v17 = vmul.f32 %v1130_v55, %v596_v28 }
 0x4ae   :  { %626 = vmatmul.f32.vlgmr.msra.gmra.mxu0 %v607_v17  ;;  %646 = vmatmul.f32.vlgmr.msrb.gmra.mxu1 %v607_v17 }
 0x52b   :  { %v627_v43 = vpop.f32.mrf.mxu0  ;;  %v647_v25 = vpop.f32.mrf.mxu1 }
 0x52c   :  { %v650_v20 = vadd.f32 %v627_v43, %v140_v45  ;;  %v651_v46 = vadd.f32 %v647_v25, %v181_v31 }
 0x52e   :  { %v1061_v47 = vmul.f32 -1.442695, %v650_v20  ;;  %1131 = vtanh.f32 %v651_v46  ;;  %v1062_v4 = vmul.f32 -1.442695, %v651_v46 }
 0x530   :  { %1133 = vpow2.f32 %v1061_v47 }
 0x534   :  { %v1132_v48 = vpop.eup %1131 }
 0x535   :  { %693 = vrot.lane.b32.xlu0 %v1132_v48, %s1264_s3 }
 0x536   :  { %v1134_v49 = vpop.eup %1133 }
 0x537   :  { %v655_v50 = vadd.f32 1.0, %v1134_v49 }
 0x539   :  { %1135 = vrcp.f32 %v655_v50  ;;  %v667_v59 = vand.u32 2147483648, %v655_v50  ;;  %v665_v56 = vand.u32 2147483647, %v655_v50  ;;  %vm661_vm3 = vweird.f32 %v655_v50 }
 0x53a   :  { %1137 = vpow2.f32 %v1062_v4 }
 0x53b   :  { %v668_v1 = vor.u32 1.1754944e-38, %v667_v59  ;;  %vm666_vm5 = vcmp.eq.f32.partialorder %v665_v56, 8.507059e+37 }
 0x53f   :  { %v1136_v52 = vpop.eup %1135 }
 0x540   :  { %v657_v63 = vmul.f32 %v1136_v52, %v655_v50  ;;  %vm662_vm2 = vweird.f32 %v1136_v52  ;;  %v1138_v5 = vpop.eup %1137 }
 0x541   :  { %vm663_vm4 = vmor %vm661_vm3, %vm662_vm2  ;;  %v674_v6 = vadd.f32 1.0, %v1138_v5 }
 0x542   :  { %v658_v8 = vsub.f32 1.0, %v657_v63 }
 0x543   :  { %1139 = vrcp.f32 %v674_v6  ;;  %v686_v24 = vand.u32 2147483648, %v674_v6  ;;  %vm680_vm7 = vweird.f32 %v674_v6  ;;  %v684_v26 = vand.u32 2147483647, %v674_v6 }
 0x544   :  { %v659_v10 = vmul.f32 %v1136_v52, %v658_v8 }
 0x545   :  { %v687_v29 = vor.u32 1.1754944e-38, %v686_v24  ;;  %vm685_vm9 = vcmp.eq.f32.partialorder %v684_v26, 8.507059e+37 }
 0x546   :  { %v660_v0 = vadd.f32 %v1136_v52, %v659_v10 }
 0x548   :  { %v664_v2 = vsel %vm663_vm4, %v1136_v52, %v660_v0 }
 0x549   :  { %v669_v3 = vsel %vm666_vm5, %v668_v1, %v664_v2  ;;  %v1140_v7 = vpop.eup %1139 }
 0x54a   :  { %691 = vrot.lane.b32.xlu2 %v669_v3, %s1264_s3  ;;  %v676_v9 = vmul.f32 %v1140_v7, %v674_v6  ;;  %vm681_vm6 = vweird.f32 %v1140_v7  ;;  %v187_v6 = vadd.f32 %v1705_v12, %v1578_v54 }
 0x54b   :  { %vm682_vm8 = vmor %vm680_vm7, %vm681_vm6 }
 0x54c   :  { %v677_v11 = vsub.f32 1.0, %v676_v9 }
 0x54e   :  { %v678_v16 = vmul.f32 %v1140_v7, %v677_v11 }
 0x550   :  { %v679_v23 = vadd.f32 %v1140_v7, %v678_v16 }
 0x552   :  { %v683_v27 = vsel %vm682_vm8, %v1140_v7, %v679_v23  ;;  %v146_v7 = vadd.f32 %v1700_v60, %v1573_v44 }
 0x553   :  { %v688_v32 = vsel %vm685_vm9, %v687_v29, %v683_v27 }
 0x5a4   :  { %v692_v13 = vpop.permute.xlu2 %691 }
 0x5a5   :  { %v695_v18 = vmul.f32 %v692_v13, %v605_v41 }
 0x5a7   :  { %v694_v14 = vpop.permute.xlu0 %693 }
 0x5a8   :  { %v696_v19 = vmul.f32 %v694_v14, %v669_v3 }
 0x5aa   :  { %v697_v21 = vadd.f32 %v696_v19, %v695_v18 }
 0x5ac   :  { %1141 = vtanh.f32 %v697_v21 }
 0x5b2   :  { %v1142_v30 = vpop.eup %1141 }
 0x5b3   :  { %v699_v33 = vmul.f32 %v1142_v30, %v688_v32 }
 0x5b5   :  { %718 = vmatmul.f32.vlgmr.msrb.gmra.mxu2 %v699_v33  ;;  %738 = vmatmul.f32.vlgmr.msrb.gmra.mxu3 %v699_v33 }
 0x638   :  { %v719_v36 = vpop.f32.mrf.mxu2  ;;  %v739_v37 = vpop.f32.mrf.mxu3 }
 0x639   :  { %v742_v38 = vadd.f32 %v719_v36, %v143_v35  ;;  %v743_v39 = vadd.f32 %v739_v37, %v184_v34 }
 0x63b   :  { %v1063_v40 = vmul.f32 -1.442695, %v742_v38  ;;  %1143 = vtanh.f32 %v743_v39  ;;  %v1064_v43 = vmul.f32 -1.442695, %v743_v39 }
 0x63d   :  { %1145 = vpow2.f32 %v1063_v40 }
 0x641   :  { %v1144_v41 = vpop.eup %1143 }
 0x642   :  { %785 = vrot.lane.b32.xlu2 %v1144_v41, %s1264_s3 }
 0x643   :  { %v1146_v42 = vpop.eup %1145 }
 0x644   :  { %v747_v53 = vadd.f32 1.0, %v1146_v42 }
 0x646   :  { %1147 = vrcp.f32 %v747_v53  ;;  %v759_v61 = vand.u32 2147483648, %v747_v53  ;;  %v757_v58 = vand.u32 2147483647, %v747_v53  ;;  %vm753_vm11 = vweird.f32 %v747_v53 }
 0x647   :  { %1149 = vpow2.f32 %v1064_v43  ;;  %v149_v43 = vadd.f32 %v1576_v51, %v1573_v44  ;;  %v986_v44 = vld [vmem:[#allocation6 + $0x50] sm:$0xff] }
 0x648   :  { %v760_v17 = vor.u32 1.1754944e-38, %v759_v61  ;;  %vm758_vm13 = vcmp.eq.f32.partialorder %v757_v58, 8.507059e+37 }
 0x64c   :  { %v1148_v57 = vpop.eup %1147 }
 0x64d   :  { %v749_v62 = vmul.f32 %v1148_v57, %v747_v53  ;;  %vm754_vm10 = vweird.f32 %v1148_v57  ;;  %v1150_v25 = vpop.eup %1149 }
 0x64e   :  { %vm755_vm12 = vmor %vm753_vm11, %vm754_vm10  ;;  %v766_v20 = vadd.f32 1.0, %v1150_v25  ;;  %v190_v25 = vadd.f32 %v1707_v22, %v1578_v54  ;;  %v985_v54 = vld [vmem:[#allocation6 + $0x48] sm:$0xff] }
 0x64f   :  { %v750_v15 = vsub.f32 1.0, %v749_v62 }
 0x650   :  { %1151 = vrcp.f32 %v766_v20  ;;  %v778_v56 = vand.u32 2147483648, %v766_v20  ;;  %vm772_vm15 = vweird.f32 %v766_v20  ;;  %v776_v0 = vand.u32 2147483647, %v766_v20 }
 0x651   :  { %v751_v55 = vmul.f32 %v1148_v57, %v750_v15 }
 0x652   :  { %v779_v2 = vor.u32 1.1754944e-38, %v778_v56  ;;  %vm777_vm1 = vcmp.eq.f32.partialorder %v776_v0, 8.507059e+37 }
 0x653   :  { %v752_v28 = vadd.f32 %v1148_v57, %v751_v55 }
 0x655   :  { %v756_v31 = vsel %vm755_vm12, %v1148_v57, %v752_v28 }
 0x656   :  { %v761_v45 = vsel %vm758_vm13, %v760_v17, %v756_v31  ;;  %v1152_v46 = vpop.eup %1151 }
 0x657   :  { %783 = vrot.lane.b32.xlu1 %v761_v45, %s1264_s3  ;;  %v768_v47 = vmul.f32 %v1152_v46, %v766_v20  ;;  %vm773_vm14 = vweird.f32 %v1152_v46  ;;  %v991_v20 = vld [vmem:[#allocation6 + $0x78] sm:$0xff] }
 0x658   :  { %vm774_vm0 = vmor %vm772_vm15, %vm773_vm14  ;;  %996 = vmatpush.msra.mxu0 %v991_v20 }
 0x659   :  { %v769_v48 = vsub.f32 1.0, %v768_v47 }
 0x65b   :  { %v770_v52 = vmul.f32 %v1152_v46, %v769_v48 }
 0x65d   :  { %v771_v10 = vadd.f32 %v1152_v46, %v770_v52  ;;  %v989_v52 = vld [vmem:[#allocation6 + $0x68] sm:$0xff] }
 0x65f   :  { %v775_v1 = vsel %vm774_vm0, %v1152_v46, %v771_v10  ;;  %v990_v46 = vld [vmem:[#allocation6 + $0x70] sm:$0xff]  ;;  %v984_v10 = vld [vmem:[#allocation6 + $0x40] sm:$0xff] }
 0x660   :  { %v780_v4 = vsel %vm777_vm1, %v779_v2, %v775_v1  ;;  %997 = vmatpush.msra.mxu0 %v990_v46 }
 0x662   :  { %998 = vmatpush.msra.mxu0 %v989_v52 }
 0x69c   :  { %v786_v49 = vpop.permute.xlu2 %785 }
 0x69d   :  { %v788_v63 = vmul.f32 %v786_v49, %v761_v45 }
 0x6c9   :  { %v784_v50 = vpop.permute.xlu1 %783 }
 0x6ca   :  { %v787_v8 = vmul.f32 %v784_v50, %v697_v21 }
 0x6cc   :  { %v789_v59 = vadd.f32 %v788_v63, %v787_v8  ;;  %v988_v8 = vld [vmem:[#allocation6 + $0x60] sm:$0xff] }
 0x6cd   :  { %999 = vmatpush.msra.mxu0 %v988_v8 }
 0x6ce   :  { %1153 = vtanh.f32 %v789_v59 }
 0x6d4   :  { %v1154_v3 = vpop.eup %1153 }
 0x6d5   :  { %v791_v5 = vmul.f32 %v1154_v3, %v780_v4 }
 0x6d7   :  { %810 = vmatmul.f32.vlgmr.msrb.gmra.mxu0 %v791_v5  ;;  %830 = vmatmul.f32.vlgmr.msra.gmra.mxu1 %v791_v5 }
 0x754   :  { %v811_v9 = vpop.f32.mrf.mxu0  ;;  %v831_v11 = vpop.f32.mrf.mxu1 }
 0x755   :  { %v834_v13 = vadd.f32 %v811_v9, %v146_v7  ;;  %v835_v14 = vadd.f32 %v831_v11, %v187_v6 }
 0x757   :  { %v1065_v16 = vmul.f32 -1.442695, %v834_v13  ;;  %1155 = vtanh.f32 %v835_v14  ;;  %v1066_v34 = vmul.f32 -1.442695, %v835_v14  ;;  %v983_v14 = vld [vmem:[#allocation6 + $0x38] sm:$0xff] }
 0x759   :  { %1157 = vpow2.f32 %v1065_v16  ;;  %v982_v16 = vld [vmem:[#allocation6 + $0x30] sm:$0xff] }
 0x75d   :  { %v1156_v18 = vpop.eup %1155 }
 0x75e   :  { %877 = vrot.lane.b32.xlu1 %v1156_v18, %s1264_s3  ;;  %v981_v18 = vld [vmem:[#allocation6 + $0x28] sm:$0xff] }
 0x75f   :  { %v1158_v19 = vpop.eup %1157 }
 0x760   :  { %v839_v21 = vadd.f32 1.0, %v1158_v19  ;;  %v980_v19 = vld [vmem:[#allocation6 + $0x20] sm:$0xff] }
 0x762   :  { %1159 = vrcp.f32 %v839_v21  ;;  %v851_v12 = vand.u32 2147483648, %v839_v21  ;;  %v849_v60 = vand.u32 2147483647, %v839_v21  ;;  %vm845_vm3 = vweird.f32 %v839_v21 }
 0x763   :  { %1161 = vpow2.f32 %v1066_v34 }
 0x764   :  { %v852_v30 = vor.u32 1.1754944e-38, %v851_v12  ;;  %vm850_vm5 = vcmp.eq.f32.partialorder %v849_v60, 8.507059e+37 }
 0x768   :  { %v1160_v23 = vpop.eup %1159 }
 0x769   :  { %v841_v24 = vmul.f32 %v1160_v23, %v839_v21  ;;  %vm846_vm2 = vweird.f32 %v1160_v23  ;;  %v1162_v35 = vpop.eup %1161  ;;  %v979_v21 = vld [vmem:[#allocation6 + $0x18] sm:$0xff] }
 0x76a   :  { %vm847_vm4 = vmor %vm845_vm3, %vm846_vm2  ;;  %v858_v36 = vadd.f32 1.0, %v1162_v35 }
 0x76b   :  { %v842_v26 = vsub.f32 1.0, %v841_v24 }
 0x76c   :  { %1163 = vrcp.f32 %v858_v36  ;;  %v870_v61 = vand.u32 2147483648, %v858_v36  ;;  %vm864_vm7 = vweird.f32 %v858_v36  ;;  %v868_v55 = vand.u32 2147483647, %v858_v36 }
 0x76d   :  { %v843_v27 = vmul.f32 %v1160_v23, %v842_v26  ;;  %v977_v26 = vld [vmem:[#allocation6 + $0x8] sm:$0xff] }
 0x76e   :  { %v871_v28 = vor.u32 1.1754944e-38, %v870_v61  ;;  %vm869_vm9 = vcmp.eq.f32.partialorder %v868_v55, 8.507059e+37 }
 0x76f   :  { %v844_v29 = vadd.f32 %v1160_v23, %v843_v27  ;;  %v976_v27 = vld [vmem:[#allocation6] sm:$0xff] }
 0x771   :  { %v848_v32 = vsel %vm847_vm4, %v1160_v23, %v844_v29  ;;  %v978_v23 = vld [vmem:[#allocation6 + $0x10] sm:$0xff] }
 0x772   :  { %v853_v33 = vsel %vm850_vm5, %v852_v30, %v848_v32  ;;  %v1164_v37 = vpop.eup %1163 }
 0x773   :  { %875 = vrot.lane.b32.xlu0 %v853_v33, %s1264_s3  ;;  %v860_v38 = vmul.f32 %v1164_v37, %v858_v36  ;;  %vm865_vm6 = vweird.f32 %v1164_v37 }
 0x774   :  { %vm866_vm8 = vmor %vm864_vm7, %vm865_vm6 }
 0x775   :  { %v861_v39 = vsub.f32 1.0, %v860_v38 }
 0x777   :  { %v862_v42 = vmul.f32 %v1164_v37, %v861_v39 }
 0x779   :  { %v863_v15 = vadd.f32 %v1164_v37, %v862_v42 }
 0x77b   :  { %v867_v58 = vsel %vm866_vm8, %v1164_v37, %v863_v15 }
 0x77c   :  { %v872_v31 = vsel %vm869_vm9, %v871_v28, %v867_v58 }
 0x7d0   :  { %v878_v40 = vpop.permute.xlu1 %877 }
 0x7d1   :  { %v880_v53 = vmul.f32 %v878_v40, %v853_v33 }
 0x7e5   :  { %v876_v41 = vpop.permute.xlu0 %875 }
 0x7e6   :  { %v879_v57 = vmul.f32 %v876_v41, %v789_v59  ;;  %v987_v59 = vld [vmem:[#allocation6 + $0x58] sm:$0xff] }
 0x7e7   :  { %1000 = vmatpush.msra.mxu0 %v987_v59 }
 0x7e8   :  { %v1773_v62 = vadd.f32 %v880_v53, %v879_v57 }
 0x7e9   :  { %1001 = vmatpush.msra.mxu0 %v986_v44 }
 0x7ea   :  { %1165 = vtanh.f32 %v1773_v62 }
 0x7eb   :  { %1002 = vmatpush.msra.mxu0 %v985_v54 }
 0x7ed   :  { %1003 = vmatpush.msra.mxu0 %v984_v10 }
 0x7ef   :  { %1004 = vmatpush.msra.mxu0 %v983_v14 }
 0x7f0   :  { %v1166_v17 = vpop.eup %1165 }
 0x7f1   :  { %v883_v45 = vmul.f32 %v1166_v17, %v872_v31  ;;  %1005 = vmatpush.msra.mxu0 %v982_v16 }
 0x7f3   :  { %902 = vmatmul.f32.vlgmr.msra.gmra.mxu2 %v883_v45  ;;  %922 = vmatmul.f32.vlgmr.msra.gmra.mxu3 %v883_v45 }
 0x7f4   :  { %1006 = vmatpush.msra.mxu0 %v981_v18 }
 0x7f6   :  { %1007 = vmatpush.msra.mxu0 %v980_v19 }
 0x7f8   :  { %1008 = vmatpush.msra.mxu0 %v979_v21 }
 0x7fa   :  { %1009 = vmatpush.msra.mxu0 %v978_v23 }
 0x7fc   :  { %1010 = vmatpush.msra.mxu0 %v977_v26 }
 0x7fe   :  { %1011 = vmatpush.msra.mxu0 %v976_v27 }
 0x876   :  { %v903_v47 = vpop.f32.mrf.mxu2  ;;  %v923_v48 = vpop.f32.mrf.mxu3 }
 0x877   :  { %v926_v49 = vadd.f32 %v903_v47, %v149_v43  ;;  %v927_v50 = vadd.f32 %v923_v48, %v190_v25 }
 0x879   :  { %v1067_v63 = vmul.f32 -1.442695, %v926_v49  ;;  %1167 = vtanh.f32 %v927_v50  ;;  %v1068_v13 = vmul.f32 -1.442695, %v927_v50 }
 0x87b   :  { %1169 = vpow2.f32 %v1067_v63 }
 0x87f   :  { %v1168_v51 = vpop.eup %1167 }
 0x880   :  { %969 = vrot.lane.b32.xlu0 %v1168_v51, %s1264_s3 }
 0x881   :  { %v1170_v22 = vpop.eup %1169 }
 0x882   :  { %v931_v56 = vadd.f32 1.0, %v1170_v22 }
 0x884   :  { %1171 = vrcp.f32 %v931_v56  ;;  %v943_v3 = vand.u32 2147483648, %v931_v56  ;;  %v941_v5 = vand.u32 2147483647, %v931_v56  ;;  %vm937_vm11 = vweird.f32 %v931_v56 }
 0x885   :  { %1173 = vpow2.f32 %v1068_v13 }
 0x886   :  { %v944_v7 = vor.u32 1.1754944e-38, %v943_v3  ;;  %vm942_vm13 = vcmp.eq.f32.partialorder %v941_v5, 8.507059e+37 }
 0x88a   :  { %v1172_v0 = vpop.eup %1171 }
 0x88b   :  { %v933_v1 = vmul.f32 %v1172_v0, %v931_v56  ;;  %vm938_vm10 = vweird.f32 %v1172_v0  ;;  %v1174_v24 = vpop.eup %1173 }
 0x88c   :  { %vm939_vm12 = vmor %vm937_vm11, %vm938_vm10  ;;  %v950_v12 = vadd.f32 1.0, %v1174_v24 }
 0x88d   :  { %v934_v2 = vsub.f32 1.0, %v933_v1 }
 0x88e   :  { %1175 = vrcp.f32 %v950_v12  ;;  %v962_v39 = vand.u32 2147483648, %v950_v12  ;;  %vm956_vm15 = vweird.f32 %v950_v12  ;;  %v960_v40 = vand.u32 2147483647, %v950_v12 }
 0x88f   :  { %v935_v4 = vmul.f32 %v1172_v0, %v934_v2 }
 0x890   :  { %v963_v42 = vor.u32 1.1754944e-38, %v962_v39  ;;  %vm961_vm1 = vcmp.eq.f32.partialorder %v960_v40, 8.507059e+37 }
 0x891   :  { %v936_v6 = vadd.f32 %v1172_v0, %v935_v4 }
 0x893   :  { %v940_v9 = vsel %vm939_vm12, %v1172_v0, %v936_v6 }
 0x894   :  { %v945_v11 = vsel %vm942_vm13, %v944_v7, %v940_v9  ;;  %v1176_v60 = vpop.eup %1175 }
 0x895   :  { %967 = vrot.lane.b32.xlu2 %v945_v11, %s1264_s3  ;;  %v952_v29 = vmul.f32 %v1176_v60, %v950_v12  ;;  %vm957_vm14 = vweird.f32 %v1176_v60 }
 0x896   :  { %vm958_vm0 = vmor %vm956_vm15, %vm957_vm14 }
 0x897   :  { %v953_v30 = vsub.f32 1.0, %v952_v29 }
 0x899   :  { %v954_v34 = vmul.f32 %v1176_v60, %v953_v30 }
 0x89b   :  { %v955_v38 = vadd.f32 %v1176_v60, %v954_v34 }
 0x89d   :  { %v959_v41 = vsel %vm958_vm0, %v1176_v60, %v955_v38 }
 0x89e   :  { %v964_v57 = vsel %vm961_vm1, %v963_v42, %v959_v41 }
 0x8ef   :  { %v968_v32 = vpop.permute.xlu2 %967 }
 0x8f0   :  { %v971_v35 = vmul.f32 %v968_v32, %v1773_v62  ;;  %v1082_v62 = vld [vmem:[%s1794_s5] ss:$0 sm:$0xff] }
 0x8f2   :  { %v970_v33 = vpop.permute.xlu0 %969 }
 0x8f3   :  { %v972_v36 = vmul.f32 %v970_v33, %v945_v11 }
 0x8f5   :  { %v973_v37 = vadd.f32 %v972_v36, %v971_v35 }
 0x8f7   :  { %1177 = vtanh.f32 %v973_v37 }
 0x8fd   :  { %v1178_v53 = vpop.eup %1177 }
 0x8fe   :  { %v975_v15 = vmul.f32 %v1178_v53, %v964_v57 }
 0x900   :  { %1012 = vmatmul.f32.vlgmr.msra.gmra.mxu0 %v975_v15 }
 0x97d   :  { %v1013_v61 = vpop.f32.mrf.mxu0 }
 0x97e   :  { %v1014_v55 = vadd.f32 %v1082_v62, %v1013_v61 }
 0x980   :  { %1016 = vst [vmem:[#allocation8] sm:$0xff] %v1014_v55 }
 0x981   :  { %1027 = dma.vmem_to_hbm [thread:$0]  %s1023_s18, 128, %s1025_s21, [#allocation5]  }
 0x982   :  { %1255 = dma.done.wait [#allocation5], 128  }
 0x983   :  { %1256 = vsyncadd [#allocation5], 4294967168 }
 0x984   :  { %1032 = vsyncpa [#allocation4], 1 }
 0x985   :  { %1033 = vsyncpa [#allocation7], 1 }
 0x986   :  { %1034 = vsyncpa [#allocation5], 1 }

</bundles_post_ra>
